<compile_context>
chip_gen: v5e
topology: v5e:2x2
jax: 0.10.0
libtpu: 0.0.40
codegen_flags: <defaults>
</compile_context>

<pallas_src>
import jax
import jax.numpy as jnp
from jax import lax
from jax.experimental import pallas as pl
from jax.experimental.pallas import tpu as pltpu

INPUT_SIZE = 20
HIDDEN_SIZE = 64
OUTPUT_SIZE = 61
OUT_PAD = 128           # fc output padded to a full 128-lane block (lane-dense stores)
LN_EPS = 1e-5
MAX_CHUNK = 1024        # timesteps per grid step (bounds VMEM, enables pipelining)
TIME_TILE = 8           # timesteps per aligned (8, ...) sublane tile


def _softplus(x):
    # PyTorch softplus: beta=1, threshold=20.
    return jnp.where(x > 20.0, x, jnp.log1p(jnp.exp(x)))


def _gru_kernel(x_ref, wih_ref, whh_ref, bx_ref, bhn_ref, gamma_ref, beta_ref,
                fcw_ref, fcb_ref, out_ref, xw_ref, hall_ref, h_ref):
    C = x_ref.shape[0]                       # chunk length (multiple of TIME_TILE)
    H = HIDDEN_SIZE

    # Hidden-state carry lives in persistent scratch; zero it on the first chunk.
    @pl.when(pl.program_id(0) == 0)
    def _():
        h_ref[...] = jnp.zeros_like(h_ref)

    # Batched input projection for the whole chunk (MXU, off the serial path).
    # bx folds b_ih (all gates) + b_hh (r, z gates).  b_hn stays inside r*(.).
    xw_ref[...] = (jnp.dot(x_ref[...], wih_ref[...],
                           preferred_element_type=jnp.float32) + bx_ref[...])

    bhn = bhn_ref[...]                       # (1, H) — a single vreg kept live
    h0 = h_ref[...]                          # (1, H)

    # Serial recurrence.  Compact (64, 192) recurrent weights: K = 64 (no
    # contraction padding), gates packed at 64-lane offsets [r | z | n].
    # TODO(synk): keep W_hh resident in the MXU weight registers across steps
    # (pltpu.matmul_push_rhs / matmul_acc_lhs / matmul_pop) to remove the
    # per-step weight streaming entirely; skipped here for portability.
    def group(g, h):
        base = pl.multiple_of(g * TIME_TILE, TIME_TILE)
        xt8 = xw_ref[pl.ds(base, TIME_TILE), :]          # aligned (8, 192) load
        hs = []
        for i in range(TIME_TILE):                        # static x8 unroll
            xt = xt8[i:i + 1, :]                          # (1, 192)
            # RHS streamed from VMEM each step: no vreg hoist -> no spills.
            hw = jnp.dot(h, whh_ref[...],
                         preferred_element_type=jnp.float32)   # (1, 192)
            # r and z share one 128-lane sigmoid.
            rz = jax.nn.sigmoid(xt[:, 0:2 * H] + hw[:, 0:2 * H])
            r = rz[:, 0:H]
            z = rz[:, H:2 * H]                            # single lane realign (XLU)
            n = jnp.tanh(xt[:, 2 * H:3 * H] + r * (hw[:, 2 * H:3 * H] + bhn))
            h = (1.0 - z) * n + z * h
            hs.append(h)
        # One aligned (8, 64) tile store per 8 steps (off the critical path).
        hall_ref[pl.ds(base, TIME_TILE), :] = jnp.concatenate(hs, axis=0)
        return h

    h_last = lax.fori_loop(0, C // TIME_TILE, group, h0)
    h_ref[...] = h_last                      # carry to the next chunk

    # ---- epilogue: LayerNorm + Linear + Softplus over the whole chunk ----
    h_all = hall_ref[...]                                 # (C, 64): no lane sub-slice
    mean = jnp.mean(h_all, axis=-1, keepdims=True)
    var = jnp.mean((h_all - mean) ** 2, axis=-1, keepdims=True)
    h_ln = ((h_all - mean) * lax.rsqrt(var + LN_EPS)) * gamma_ref[...] + beta_ref[...]
    # Dropout: identity in eval mode.
    # TODO(synk): training-mode dropout (pltpu.prng_*) not implemented.
    logits = (jnp.dot(h_ln, fcw_ref[...], preferred_element_type=jnp.float32)
              + fcb_ref[...])
    out_ref[...] = _softplus(logits)                      # (C, 128) lane-dense store


def _round_up(n, m):
    return ((n + m - 1) // m) * m


@jax.jit
def gru_forward(x, wih_p, whh_p, bx_p, bhn_p, gamma, beta, fcw_p, fcb_p):
    S = x.shape[0]
    H, I = HIDDEN_SIZE, INPUT_SIZE
    chunk = min(MAX_CHUNK, _round_up(S, TIME_TILE))
    n_chunks = pl.cdiv(S, chunk)
    # Rows past S in the last chunk read undefined data; they are computed
    # after all real timesteps, their outputs are masked on writeback and the
    # carry is never reused, so results for the real rows are unaffected.

    grid_spec = pltpu.PrefetchScalarGridSpec(
        num_scalar_prefetch=0,
        grid=(n_chunks,),
        in_specs=[
            pl.BlockSpec((chunk, I), lambda i: (i, 0)),        # x
            pl.BlockSpec((I, 3 * H), lambda i: (0, 0)),        # W_ih^T   (20, 192)
            pl.BlockSpec((H, 3 * H), lambda i: (0, 0)),        # W_hh^T   (64, 192)
            pl.BlockSpec((1, 3 * H), lambda i: (0, 0)),        # b_ih + b_hh[r,z]
            pl.BlockSpec((1, H), lambda i: (0, 0)),            # b_hn
            pl.BlockSpec((1, H), lambda i: (0, 0)),            # gamma
            pl.BlockSpec((1, H), lambda i: (0, 0)),            # beta
            pl.BlockSpec((H, OUT_PAD), lambda i: (0, 0)),      # fc W^T (padded lanes)
            pl.BlockSpec((1, OUT_PAD), lambda i: (0, 0)),      # fc b   (padded lanes)
        ],
        out_specs=pl.BlockSpec((chunk, OUT_PAD), lambda i: (i, 0)),
        scratch_shapes=[
            pltpu.VMEM((chunk, 3 * H), jnp.float32),   # input projections
            pltpu.VMEM((chunk, H), jnp.float32),       # hidden states
            pltpu.VMEM((1, H), jnp.float32),           # hidden-state carry
        ],
    )
    out = pl.pallas_call(
        _gru_kernel,
        out_shape=jax.ShapeDtypeStruct((S, OUT_PAD), jnp.float32),
        grid_spec=grid_spec,
        compiler_params=pltpu.CompilerParams(
            dimension_semantics=("arbitrary",)),
    )(x, wih_p, whh_p, bx_p, bhn_p, gamma, beta, fcw_p, fcb_p)
    return out[:, :OUTPUT_SIZE]


def init_params(key):
    """Raw params with PyTorch module shapes."""
    H, I, O = HIDDEN_SIZE, INPUT_SIZE, OUTPUT_SIZE
    k = 1.0 / jnp.sqrt(H)
    keys = jax.random.split(key, 6)
    w_ih = jax.random.uniform(keys[0], (3 * H, I), jnp.float32, -k, k)
    w_hh = jax.random.uniform(keys[1], (3 * H, H), jnp.float32, -k, k)
    b_ih = jax.random.uniform(keys[2], (3 * H,), jnp.float32, -k, k)
    b_hh = jax.random.uniform(keys[3], (3 * H,), jnp.float32, -k, k)
    fc_w = jax.random.uniform(keys[4], (O, H), jnp.float32, -k, k)
    fc_b = jax.random.uniform(keys[5], (O,), jnp.float32, -k, k)
    gamma = jnp.ones((H,), jnp.float32)
    beta = jnp.zeros((H,), jnp.float32)
    return dict(w_ih=w_ih, w_hh=w_hh, b_ih=b_ih, b_hh=b_hh,
                fc_w=fc_w, fc_b=fc_b, gamma=gamma, beta=beta)


def prepare_params(raw):
    """Kernel layout: compact [r|z|n] gate packing, lane-padded fc output.

    * W_ih^T: (20, 192); W_hh^T: (64, 192) — no contraction padding.
    * bx = b_ih (all gates) + b_hh (r, z gates only); b_hn kept separate so it
      stays inside the r * (.) term (PyTorch GRU semantics).
    * fc weights / bias padded to 128 output lanes (padding columns are zero).
    """
    H, O = HIDDEN_SIZE, OUTPUT_SIZE
    wih_p = raw["w_ih"].T                       # (I, 3H), gates at 64-lane offsets
    whh_p = raw["w_hh"].T                       # (H, 3H)
    bx = raw["b_ih"] + jnp.concatenate(
        [raw["b_hh"][:2 * H], jnp.zeros((H,), jnp.float32)])
    bhn = raw["b_hh"][2 * H:]
    fcw_p = jnp.zeros((H, OUT_PAD), jnp.float32).at[:, :O].set(raw["fc_w"].T)
    fcb_p = jnp.zeros((1, OUT_PAD), jnp.float32).at[0, :O].set(raw["fc_b"])
    return dict(
        wih_p=wih_p, whh_p=whh_p,
        bx_p=bx.reshape(1, 3 * H), bhn_p=bhn.reshape(1, H),
        gamma=raw["gamma"].reshape(1, H),
        beta=raw["beta"].reshape(1, H),
        fcw_p=fcw_p, fcb_p=fcb_p,
    )


def gru_reference(x, raw):
    """Pure-JAX reference mirroring the PyTorch forward (eval mode)."""
    H = HIDDEN_SIZE
    w_ih_t = raw["w_ih"].T
    w_hh_t = raw["w_hh"].T
    xw = x @ w_ih_t + raw["b_ih"][None, :]

    def step(h, xt):
        xt = xt[None, :]
        hw = h @ w_hh_t + raw["b_hh"][None, :]
        r = jax.nn.sigmoid(xt[:, :H] + hw[:, :H])
        z = jax.nn.sigmoid(xt[:, H:2 * H] + hw[:, H:2 * H])
        n = jnp.tanh(xt[:, 2 * H:] + r * hw[:, 2 * H:])
        h_new = (1.0 - z) * n + z * h
        return h_new, h_new[0]

    _, hs = lax.scan(step, jnp.zeros((1, H), jnp.float32), xw)
    mean = jnp.mean(hs, axis=-1, keepdims=True)
    var = jnp.mean((hs - mean) ** 2, axis=-1, keepdims=True)
    h_ln = (hs - mean) / jnp.sqrt(var + LN_EPS) * raw["gamma"] + raw["beta"]
    logits = h_ln @ raw["fc_w"].T + raw["fc_b"]
    return _softplus(logits)


if __name__ == "__main__":
    key = jax.random.PRNGKey(0)
    kx, kp = jax.random.split(key)
    SEQ = 8
    x = jax.random.normal(kx, (SEQ, INPUT_SIZE), jnp.float32)
    raw = init_params(kp)
    p = prepare_params(raw)

    out = gru_forward(x, p["wih_p"], p["whh_p"], p["bx_p"], p["bhn_p"],
                      p["gamma"], p["beta"], p["fcw_p"], p["fcb_p"])
    out = jax.block_until_ready(out)

    ref = gru_reference(x, raw)
    assert out.shape == (SEQ, OUTPUT_SIZE)
    assert jnp.allclose(out, ref, atol=1e-4, rtol=1e-4), "mismatch vs reference"
    print("KERNEL_OK")
</pallas_src>

<mosaic_0001>
module attributes {stable_mosaic.version = 11 : i64} {
  func.func @_gru_kernel(%arg0: i32, %arg1: memref<8x20xf32, #tpu.memory_space<vmem>>, %arg2: memref<20x192xf32, #tpu.memory_space<vmem>>, %arg3: memref<64x192xf32, #tpu.memory_space<vmem>>, %arg4: memref<1x192xf32, #tpu.memory_space<vmem>>, %arg5: memref<1x64xf32, #tpu.memory_space<vmem>>, %arg6: memref<1x64xf32, #tpu.memory_space<vmem>>, %arg7: memref<1x64xf32, #tpu.memory_space<vmem>>, %arg8: memref<64x128xf32, #tpu.memory_space<vmem>>, %arg9: memref<1x128xf32, #tpu.memory_space<vmem>>, %arg10: memref<8x128xf32, #tpu.memory_space<vmem>>, %arg11: memref<8x192xf32, #tpu.memory_space<vmem>>, %arg12: memref<8x64xf32, #tpu.memory_space<vmem>>, %arg13: memref<1x64xf32, #tpu.memory_space<vmem>>) attributes {dimension_semantics = [#tpu.dimension_semantics<arbitrary>], iteration_bounds = array<i64: 1>, scalar_prefetch = 0 : i64, scratch_operands = 3 : i64, tpu.core_type = #tpu.core_type<tc>, window_params = [{transform_indices = @transform_0, window_bounds = array<i64: 8, 20>}, {pipeline_mode = #tpu.pipeline_mode<synchronous>, transform_indices = @transform_1, window_bounds = array<i64: 20, 192>}, {pipeline_mode = #tpu.pipeline_mode<synchronous>, transform_indices = @transform_2, window_bounds = array<i64: 64, 192>}, {pipeline_mode = #tpu.pipeline_mode<synchronous>, transform_indices = @transform_3, window_bounds = array<i64: 1, 192>}, {pipeline_mode = #tpu.pipeline_mode<synchronous>, transform_indices = @transform_4, window_bounds = array<i64: 1, 64>}, {pipeline_mode = #tpu.pipeline_mode<synchronous>, transform_indices = @transform_5, window_bounds = array<i64: 1, 64>}, {pipeline_mode = #tpu.pipeline_mode<synchronous>, transform_indices = @transform_6, window_bounds = array<i64: 1, 64>}, {pipeline_mode = #tpu.pipeline_mode<synchronous>, transform_indices = @transform_7, window_bounds = array<i64: 64, 128>}, {pipeline_mode = #tpu.pipeline_mode<synchronous>, transform_indices = @transform_8, window_bounds = array<i64: 1, 128>}, {transform_indices = @transform_9, window_bounds = array<i64: 8, 128>}]} {
    %c0_i32 = arith.constant 0 : i32
    %0 = arith.cmpi eq, %arg0, %c0_i32 : i32
    %1 = arith.extui %0 : i1 to i32
    %c0_i32_0 = arith.constant 0 : i32
    %2 = arith.cmpi ne, %1, %c0_i32_0 : i32
    scf.if %2 {
      %cst_76 = arith.constant 0.000000e+00 : f32
      %248 = vector.broadcast %cst_76 : f32 to vector<1x64xf32>
      %c0_77 = arith.constant 0 : index
      %c0_78 = arith.constant 0 : index
      %249 = vector.load %arg13[%c0_77, %c0_78] : memref<1x64xf32, #tpu.memory_space<vmem>>, vector<1x64xf32>
      tpu.vector_store %arg13[%c0_77, %c0_78], %248 {strides = array<i32>} : memref<1x64xf32, #tpu.memory_space<vmem>>, vector<1x64xf32>,
    } else {
    }
    %c0 = arith.constant 0 : index
    %c0_1 = arith.constant 0 : index
    %3 = vector.load %arg1[%c0, %c0_1] : memref<8x20xf32, #tpu.memory_space<vmem>>, vector<8x20xf32>
    %c0_2 = arith.constant 0 : index
    %c0_3 = arith.constant 0 : index
    %4 = vector.load %arg2[%c0_2, %c0_3] : memref<20x192xf32, #tpu.memory_space<vmem>>, vector<20x192xf32>
    %cst = arith.constant dense<0.000000e+00> : vector<8x192xf32>
    %5 = tpu.matmul %3, %4, %cst {dimension_numbers = #tpu.dot_dimension_numbers<[1], [0], [0], [1], [0, 0, 1, 1], [], []>} : vector<8x20xf32>, vector<20x192xf32>, vector<8x192xf32> -> vector<8x192xf32>
    %c0_4 = arith.constant 0 : index
    %c0_5 = arith.constant 0 : index
    %6 = vector.load %arg4[%c0_4, %c0_5] : memref<1x192xf32, #tpu.memory_space<vmem>>, vector<1x192xf32>
    %7 = vector.broadcast %6 : vector<1x192xf32> to vector<8x192xf32>
    %8 = arith.addf %5, %7 : vector<8x192xf32>
    %c0_6 = arith.constant 0 : index
    %c0_7 = arith.constant 0 : index
    %9 = vector.load %arg11[%c0_6, %c0_7] : memref<8x192xf32, #tpu.memory_space<vmem>>, vector<8x192xf32>
    tpu.vector_store %arg11[%c0_6, %c0_7], %8 {strides = array<i32>} : memref<8x192xf32, #tpu.memory_space<vmem>>, vector<8x192xf32>,
    %c0_8 = arith.constant 0 : index
    %c0_9 = arith.constant 0 : index
    %10 = vector.load %arg5[%c0_8, %c0_9] : memref<1x64xf32, #tpu.memory_space<vmem>>, vector<1x64xf32>
    %c0_10 = arith.constant 0 : index
    %c0_11 = arith.constant 0 : index
    %11 = vector.load %arg13[%c0_10, %c0_11] : memref<1x64xf32, #tpu.memory_space<vmem>>, vector<1x64xf32>
    %c0_i32_12 = arith.constant 0 : i32
    %c8_i32 = arith.constant 8 : i32
    %12 = arith.muli %c0_i32_12, %c8_i32 : i32
    %13 = tpu.assume_multiple %12, 8 : i32
    %14 = arith.index_cast %13 : i32 to index
    %c0_13 = arith.constant 0 : index
    %15 = vector.load %arg11[%14, %c0_13] : memref<8x192xf32, #tpu.memory_space<vmem>>, vector<8x192xf32>
    %16 = vector.extract_strided_slice %15 {offsets = [0, 0], sizes = [1, 192], strides = [1, 1]} : vector<8x192xf32> to vector<1x192xf32>
    %c0_14 = arith.constant 0 : index
    %c0_15 = arith.constant 0 : index
    %17 = vector.load %arg3[%c0_14, %c0_15] : memref<64x192xf32, #tpu.memory_space<vmem>>, vector<64x192xf32>
    %cst_16 = arith.constant dense<0.000000e+00> : vector<1x192xf32>
    %18 = tpu.matmul %11, %17, %cst_16 {dimension_numbers = #tpu.dot_dimension_numbers<[1], [0], [0], [1], [0, 0, 1, 1], [], []>} : vector<1x64xf32>, vector<64x192xf32>, vector<1x192xf32> -> vector<1x192xf32>
    %19 = vector.extract_strided_slice %16 {offsets = [0, 0], sizes = [1, 128], strides = [1, 1]} : vector<1x192xf32> to vector<1x128xf32>
    %20 = vector.extract_strided_slice %18 {offsets = [0, 0], sizes = [1, 128], strides = [1, 1]} : vector<1x192xf32> to vector<1x128xf32>
    %21 = arith.addf %19, %20 : vector<1x128xf32>
    %22 = arith.negf %21 : vector<1x128xf32>
    %23 = math.exp %22 : vector<1x128xf32>
    %cst_17 = arith.constant 1.000000e+00 : f32
    %24 = vector.broadcast %cst_17 : f32 to vector<1x128xf32>
    %25 = arith.addf %24, %23 : vector<1x128xf32>
    %26 = arith.divf %24, %25 : vector<1x128xf32>
    %27 = vector.extract_strided_slice %26 {offsets = [0, 0], sizes = [1, 64], strides = [1, 1]} : vector<1x128xf32> to vector<1x64xf32>
    %28 = vector.extract_strided_slice %26 {offsets = [0, 64], sizes = [1, 64], strides = [1, 1]} : vector<1x128xf32> to vector<1x64xf32>
    %29 = vector.extract_strided_slice %16 {offsets = [0, 128], sizes = [1, 64], strides = [1, 1]} : vector<1x192xf32> to vector<1x64xf32>
    %30 = vector.extract_strided_slice %18 {offsets = [0, 128], sizes = [1, 64], strides = [1, 1]} : vector<1x192xf32> to vector<1x64xf32>
    %31 = arith.addf %30, %10 : vector<1x64xf32>
    %32 = arith.mulf %27, %31 : vector<1x64xf32>
    %33 = arith.addf %29, %32 : vector<1x64xf32>
    %34 = math.tanh %33 : vector<1x64xf32>
    %cst_18 = arith.constant 1.000000e+00 : f32
    %35 = vector.broadcast %cst_18 : f32 to vector<1x64xf32>
    %36 = arith.subf %35, %28 : vector<1x64xf32>
    %37 = arith.mulf %36, %34 : vector<1x64xf32>
    %38 = arith.mulf %28, %11 : vector<1x64xf32>
    %39 = arith.addf %37, %38 : vector<1x64xf32>
    %40 = vector.extract_strided_slice %15 {offsets = [1, 0], sizes = [1, 192], strides = [1, 1]} : vector<8x192xf32> to vector<1x192xf32>
    %c0_19 = arith.constant 0 : index
    %c0_20 = arith.constant 0 : index
    %41 = vector.load %arg3[%c0_19, %c0_20] : memref<64x192xf32, #tpu.memory_space<vmem>>, vector<64x192xf32>
    %cst_21 = arith.constant dense<0.000000e+00> : vector<1x192xf32>
    %42 = tpu.matmul %39, %41, %cst_21 {dimension_numbers = #tpu.dot_dimension_numbers<[1], [0], [0], [1], [0, 0, 1, 1], [], []>} : vector<1x64xf32>, vector<64x192xf32>, vector<1x192xf32> -> vector<1x192xf32>
    %43 = vector.extract_strided_slice %40 {offsets = [0, 0], sizes = [1, 128], strides = [1, 1]} : vector<1x192xf32> to vector<1x128xf32>
    %44 = vector.extract_strided_slice %42 {offsets = [0, 0], sizes = [1, 128], strides = [1, 1]} : vector<1x192xf32> to vector<1x128xf32>
    %45 = arith.addf %43, %44 : vector<1x128xf32>
    %46 = arith.negf %45 : vector<1x128xf32>
    %47 = math.exp %46 : vector<1x128xf32>
    %cst_22 = arith.constant 1.000000e+00 : f32
    %48 = vector.broadcast %cst_22 : f32 to vector<1x128xf32>
    %49 = arith.addf %48, %47 : vector<1x128xf32>
    %50 = arith.divf %48, %49 : vector<1x128xf32>
    %51 = vector.extract_strided_slice %50 {offsets = [0, 0], sizes = [1, 64], strides = [1, 1]} : vector<1x128xf32> to vector<1x64xf32>
    %52 = vector.extract_strided_slice %50 {offsets = [0, 64], sizes = [1, 64], strides = [1, 1]} : vector<1x128xf32> to vector<1x64xf32>
    %53 = vector.extract_strided_slice %40 {offsets = [0, 128], sizes = [1, 64], strides = [1, 1]} : vector<1x192xf32> to vector<1x64xf32>
    %54 = vector.extract_strided_slice %42 {offsets = [0, 128], sizes = [1, 64], strides = [1, 1]} : vector<1x192xf32> to vector<1x64xf32>
    %55 = arith.addf %54, %10 : vector<1x64xf32>
    %56 = arith.mulf %51, %55 : vector<1x64xf32>
    %57 = arith.addf %53, %56 : vector<1x64xf32>
    %58 = math.tanh %57 : vector<1x64xf32>
    %cst_23 = arith.constant 1.000000e+00 : f32
    %59 = vector.broadcast %cst_23 : f32 to vector<1x64xf32>
    %60 = arith.subf %59, %52 : vector<1x64xf32>
    %61 = arith.mulf %60, %58 : vector<1x64xf32>
    %62 = arith.mulf %52, %39 : vector<1x64xf32>
    %63 = arith.addf %61, %62 : vector<1x64xf32>
    %64 = vector.extract_strided_slice %15 {offsets = [2, 0], sizes = [1, 192], strides = [1, 1]} : vector<8x192xf32> to vector<1x192xf32>
    %c0_24 = arith.constant 0 : index
    %c0_25 = arith.constant 0 : index
    %65 = vector.load %arg3[%c0_24, %c0_25] : memref<64x192xf32, #tpu.memory_space<vmem>>, vector<64x192xf32>
    %cst_26 = arith.constant dense<0.000000e+00> : vector<1x192xf32>
    %66 = tpu.matmul %63, %65, %cst_26 {dimension_numbers = #tpu.dot_dimension_numbers<[1], [0], [0], [1], [0, 0, 1, 1], [], []>} : vector<1x64xf32>, vector<64x192xf32>, vector<1x192xf32> -> vector<1x192xf32>
    %67 = vector.extract_strided_slice %64 {offsets = [0, 0], sizes = [1, 128], strides = [1, 1]} : vector<1x192xf32> to vector<1x128xf32>
    %68 = vector.extract_strided_slice %66 {offsets = [0, 0], sizes = [1, 128], strides = [1, 1]} : vector<1x192xf32> to vector<1x128xf32>
    %69 = arith.addf %67, %68 : vector<1x128xf32>
    %70 = arith.negf %69 : vector<1x128xf32>
    %71 = math.exp %70 : vector<1x128xf32>
    %cst_27 = arith.constant 1.000000e+00 : f32
    %72 = vector.broadcast %cst_27 : f32 to vector<1x128xf32>
    %73 = arith.addf %72, %71 : vector<1x128xf32>
    %74 = arith.divf %72, %73 : vector<1x128xf32>
    %75 = vector.extract_strided_slice %74 {offsets = [0, 0], sizes = [1, 64], strides = [1, 1]} : vector<1x128xf32> to vector<1x64xf32>
    %76 = vector.extract_strided_slice %74 {offsets = [0, 64], sizes = [1, 64], strides = [1, 1]} : vector<1x128xf32> to vector<1x64xf32>
    %77 = vector.extract_strided_slice %64 {offsets = [0, 128], sizes = [1, 64], strides = [1, 1]} : vector<1x192xf32> to vector<1x64xf32>
    %78 = vector.extract_strided_slice %66 {offsets = [0, 128], sizes = [1, 64], strides = [1, 1]} : vector<1x192xf32> to vector<1x64xf32>
    %79 = arith.addf %78, %10 : vector<1x64xf32>
    %80 = arith.mulf %75, %79 : vector<1x64xf32>
    %81 = arith.addf %77, %80 : vector<1x64xf32>
    %82 = math.tanh %81 : vector<1x64xf32>
    %cst_28 = arith.constant 1.000000e+00 : f32
    %83 = vector.broadcast %cst_28 : f32 to vector<1x64xf32>
    %84 = arith.subf %83, %76 : vector<1x64xf32>
    %85 = arith.mulf %84, %82 : vector<1x64xf32>
    %86 = arith.mulf %76, %63 : vector<1x64xf32>
    %87 = arith.addf %85, %86 : vector<1x64xf32>
    %88 = vector.extract_strided_slice %15 {offsets = [3, 0], sizes = [1, 192], strides = [1, 1]} : vector<8x192xf32> to vector<1x192xf32>
    %c0_29 = arith.constant 0 : index
    %c0_30 = arith.constant 0 : index
    %89 = vector.load %arg3[%c0_29, %c0_30] : memref<64x192xf32, #tpu.memory_space<vmem>>, vector<64x192xf32>
    %cst_31 = arith.constant dense<0.000000e+00> : vector<1x192xf32>
    %90 = tpu.matmul %87, %89, %cst_31 {dimension_numbers = #tpu.dot_dimension_numbers<[1], [0], [0], [1], [0, 0, 1, 1], [], []>} : vector<1x64xf32>, vector<64x192xf32>, vector<1x192xf32> -> vector<1x192xf32>
    %91 = vector.extract_strided_slice %88 {offsets = [0, 0], sizes = [1, 128], strides = [1, 1]} : vector<1x192xf32> to vector<1x128xf32>
    %92 = vector.extract_strided_slice %90 {offsets = [0, 0], sizes = [1, 128], strides = [1, 1]} : vector<1x192xf32> to vector<1x128xf32>
    %93 = arith.addf %91, %92 : vector<1x128xf32>
    %94 = arith.negf %93 : vector<1x128xf32>
    %95 = math.exp %94 : vector<1x128xf32>
    %cst_32 = arith.constant 1.000000e+00 : f32
    %96 = vector.broadcast %cst_32 : f32 to vector<1x128xf32>
    %97 = arith.addf %96, %95 : vector<1x128xf32>
    %98 = arith.divf %96, %97 : vector<1x128xf32>
    %99 = vector.extract_strided_slice %98 {offsets = [0, 0], sizes = [1, 64], strides = [1, 1]} : vector<1x128xf32> to vector<1x64xf32>
    %100 = vector.extract_strided_slice %98 {offsets = [0, 64], sizes = [1, 64], strides = [1, 1]} : vector<1x128xf32> to vector<1x64xf32>
    %101 = vector.extract_strided_slice %88 {offsets = [0, 128], sizes = [1, 64], strides = [1, 1]} : vector<1x192xf32> to vector<1x64xf32>
    %102 = vector.extract_strided_slice %90 {offsets = [0, 128], sizes = [1, 64], strides = [1, 1]} : vector<1x192xf32> to vector<1x64xf32>
    %103 = arith.addf %102, %10 : vector<1x64xf32>
    %104 = arith.mulf %99, %103 : vector<1x64xf32>
    %105 = arith.addf %101, %104 : vector<1x64xf32>
    %106 = math.tanh %105 : vector<1x64xf32>
    %cst_33 = arith.constant 1.000000e+00 : f32
    %107 = vector.broadcast %cst_33 : f32 to vector<1x64xf32>
    %108 = arith.subf %107, %100 : vector<1x64xf32>
    %109 = arith.mulf %108, %106 : vector<1x64xf32>
    %110 = arith.mulf %100, %87 : vector<1x64xf32>
    %111 = arith.addf %109, %110 : vector<1x64xf32>
    %112 = vector.extract_strided_slice %15 {offsets = [4, 0], sizes = [1, 192], strides = [1, 1]} : vector<8x192xf32> to vector<1x192xf32>
    %c0_34 = arith.constant 0 : index
    %c0_35 = arith.constant 0 : index
    %113 = vector.load %arg3[%c0_34, %c0_35] : memref<64x192xf32, #tpu.memory_space<vmem>>, vector<64x192xf32>
    %cst_36 = arith.constant dense<0.000000e+00> : vector<1x192xf32>
    %114 = tpu.matmul %111, %113, %cst_36 {dimension_numbers = #tpu.dot_dimension_numbers<[1], [0], [0], [1], [0, 0, 1, 1], [], []>} : vector<1x64xf32>, vector<64x192xf32>, vector<1x192xf32> -> vector<1x192xf32>
    %115 = vector.extract_strided_slice %112 {offsets = [0, 0], sizes = [1, 128], strides = [1, 1]} : vector<1x192xf32> to vector<1x128xf32>
    %116 = vector.extract_strided_slice %114 {offsets = [0, 0], sizes = [1, 128], strides = [1, 1]} : vector<1x192xf32> to vector<1x128xf32>
    %117 = arith.addf %115, %116 : vector<1x128xf32>
    %118 = arith.negf %117 : vector<1x128xf32>
    %119 = math.exp %118 : vector<1x128xf32>
    %cst_37 = arith.constant 1.000000e+00 : f32
    %120 = vector.broadcast %cst_37 : f32 to vector<1x128xf32>
    %121 = arith.addf %120, %119 : vector<1x128xf32>
    %122 = arith.divf %120, %121 : vector<1x128xf32>
    %123 = vector.extract_strided_slice %122 {offsets = [0, 0], sizes = [1, 64], strides = [1, 1]} : vector<1x128xf32> to vector<1x64xf32>
    %124 = vector.extract_strided_slice %122 {offsets = [0, 64], sizes = [1, 64], strides = [1, 1]} : vector<1x128xf32> to vector<1x64xf32>
    %125 = vector.extract_strided_slice %112 {offsets = [0, 128], sizes = [1, 64], strides = [1, 1]} : vector<1x192xf32> to vector<1x64xf32>
    %126 = vector.extract_strided_slice %114 {offsets = [0, 128], sizes = [1, 64], strides = [1, 1]} : vector<1x192xf32> to vector<1x64xf32>
    %127 = arith.addf %126, %10 : vector<1x64xf32>
    %128 = arith.mulf %123, %127 : vector<1x64xf32>
    %129 = arith.addf %125, %128 : vector<1x64xf32>
    %130 = math.tanh %129 : vector<1x64xf32>
    %cst_38 = arith.constant 1.000000e+00 : f32
    %131 = vector.broadcast %cst_38 : f32 to vector<1x64xf32>
    %132 = arith.subf %131, %124 : vector<1x64xf32>
    %133 = arith.mulf %132, %130 : vector<1x64xf32>
    %134 = arith.mulf %124, %111 : vector<1x64xf32>
    %135 = arith.addf %133, %134 : vector<1x64xf32>
    %136 = vector.extract_strided_slice %15 {offsets = [5, 0], sizes = [1, 192], strides = [1, 1]} : vector<8x192xf32> to vector<1x192xf32>
    %c0_39 = arith.constant 0 : index
    %c0_40 = arith.constant 0 : index
    %137 = vector.load %arg3[%c0_39, %c0_40] : memref<64x192xf32, #tpu.memory_space<vmem>>, vector<64x192xf32>
    %cst_41 = arith.constant dense<0.000000e+00> : vector<1x192xf32>
    %138 = tpu.matmul %135, %137, %cst_41 {dimension_numbers = #tpu.dot_dimension_numbers<[1], [0], [0], [1], [0, 0, 1, 1], [], []>} : vector<1x64xf32>, vector<64x192xf32>, vector<1x192xf32> -> vector<1x192xf32>
    %139 = vector.extract_strided_slice %136 {offsets = [0, 0], sizes = [1, 128], strides = [1, 1]} : vector<1x192xf32> to vector<1x128xf32>
    %140 = vector.extract_strided_slice %138 {offsets = [0, 0], sizes = [1, 128], strides = [1, 1]} : vector<1x192xf32> to vector<1x128xf32>
    %141 = arith.addf %139, %140 : vector<1x128xf32>
    %142 = arith.negf %141 : vector<1x128xf32>
    %143 = math.exp %142 : vector<1x128xf32>
    %cst_42 = arith.constant 1.000000e+00 : f32
    %144 = vector.broadcast %cst_42 : f32 to vector<1x128xf32>
    %145 = arith.addf %144, %143 : vector<1x128xf32>
    %146 = arith.divf %144, %145 : vector<1x128xf32>
    %147 = vector.extract_strided_slice %146 {offsets = [0, 0], sizes = [1, 64], strides = [1, 1]} : vector<1x128xf32> to vector<1x64xf32>
    %148 = vector.extract_strided_slice %146 {offsets = [0, 64], sizes = [1, 64], strides = [1, 1]} : vector<1x128xf32> to vector<1x64xf32>
    %149 = vector.extract_strided_slice %136 {offsets = [0, 128], sizes = [1, 64], strides = [1, 1]} : vector<1x192xf32> to vector<1x64xf32>
    %150 = vector.extract_strided_slice %138 {offsets = [0, 128], sizes = [1, 64], strides = [1, 1]} : vector<1x192xf32> to vector<1x64xf32>
    %151 = arith.addf %150, %10 : vector<1x64xf32>
    %152 = arith.mulf %147, %151 : vector<1x64xf32>
    %153 = arith.addf %149, %152 : vector<1x64xf32>
    %154 = math.tanh %153 : vector<1x64xf32>
    %cst_43 = arith.constant 1.000000e+00 : f32
    %155 = vector.broadcast %cst_43 : f32 to vector<1x64xf32>
    %156 = arith.subf %155, %148 : vector<1x64xf32>
    %157 = arith.mulf %156, %154 : vector<1x64xf32>
    %158 = arith.mulf %148, %135 : vector<1x64xf32>
    %159 = arith.addf %157, %158 : vector<1x64xf32>
    %160 = vector.extract_strided_slice %15 {offsets = [6, 0], sizes = [1, 192], strides = [1, 1]} : vector<8x192xf32> to vector<1x192xf32>
    %c0_44 = arith.constant 0 : index
    %c0_45 = arith.constant 0 : index
    %161 = vector.load %arg3[%c0_44, %c0_45] : memref<64x192xf32, #tpu.memory_space<vmem>>, vector<64x192xf32>
    %cst_46 = arith.constant dense<0.000000e+00> : vector<1x192xf32>
    %162 = tpu.matmul %159, %161, %cst_46 {dimension_numbers = #tpu.dot_dimension_numbers<[1], [0], [0], [1], [0, 0, 1, 1], [], []>} : vector<1x64xf32>, vector<64x192xf32>, vector<1x192xf32> -> vector<1x192xf32>
    %163 = vector.extract_strided_slice %160 {offsets = [0, 0], sizes = [1, 128], strides = [1, 1]} : vector<1x192xf32> to vector<1x128xf32>
    %164 = vector.extract_strided_slice %162 {offsets = [0, 0], sizes = [1, 128], strides = [1, 1]} : vector<1x192xf32> to vector<1x128xf32>
    %165 = arith.addf %163, %164 : vector<1x128xf32>
    %166 = arith.negf %165 : vector<1x128xf32>
    %167 = math.exp %166 : vector<1x128xf32>
    %cst_47 = arith.constant 1.000000e+00 : f32
    %168 = vector.broadcast %cst_47 : f32 to vector<1x128xf32>
    %169 = arith.addf %168, %167 : vector<1x128xf32>
    %170 = arith.divf %168, %169 : vector<1x128xf32>
    %171 = vector.extract_strided_slice %170 {offsets = [0, 0], sizes = [1, 64], strides = [1, 1]} : vector<1x128xf32> to vector<1x64xf32>
    %172 = vector.extract_strided_slice %170 {offsets = [0, 64], sizes = [1, 64], strides = [1, 1]} : vector<1x128xf32> to vector<1x64xf32>
    %173 = vector.extract_strided_slice %160 {offsets = [0, 128], sizes = [1, 64], strides = [1, 1]} : vector<1x192xf32> to vector<1x64xf32>
    %174 = vector.extract_strided_slice %162 {offsets = [0, 128], sizes = [1, 64], strides = [1, 1]} : vector<1x192xf32> to vector<1x64xf32>
    %175 = arith.addf %174, %10 : vector<1x64xf32>
    %176 = arith.mulf %171, %175 : vector<1x64xf32>
    %177 = arith.addf %173, %176 : vector<1x64xf32>
    %178 = math.tanh %177 : vector<1x64xf32>
    %cst_48 = arith.constant 1.000000e+00 : f32
    %179 = vector.broadcast %cst_48 : f32 to vector<1x64xf32>
    %180 = arith.subf %179, %172 : vector<1x64xf32>
    %181 = arith.mulf %180, %178 : vector<1x64xf32>
    %182 = arith.mulf %172, %159 : vector<1x64xf32>
    %183 = arith.addf %181, %182 : vector<1x64xf32>
    %184 = vector.extract_strided_slice %15 {offsets = [7, 0], sizes = [1, 192], strides = [1, 1]} : vector<8x192xf32> to vector<1x192xf32>
    %c0_49 = arith.constant 0 : index
    %c0_50 = arith.constant 0 : index
    %185 = vector.load %arg3[%c0_49, %c0_50] : memref<64x192xf32, #tpu.memory_space<vmem>>, vector<64x192xf32>
    %cst_51 = arith.constant dense<0.000000e+00> : vector<1x192xf32>
    %186 = tpu.matmul %183, %185, %cst_51 {dimension_numbers = #tpu.dot_dimension_numbers<[1], [0], [0], [1], [0, 0, 1, 1], [], []>} : vector<1x64xf32>, vector<64x192xf32>, vector<1x192xf32> -> vector<1x192xf32>
    %187 = vector.extract_strided_slice %184 {offsets = [0, 0], sizes = [1, 128], strides = [1, 1]} : vector<1x192xf32> to vector<1x128xf32>
    %188 = vector.extract_strided_slice %186 {offsets = [0, 0], sizes = [1, 128], strides = [1, 1]} : vector<1x192xf32> to vector<1x128xf32>
    %189 = arith.addf %187, %188 : vector<1x128xf32>
    %190 = arith.negf %189 : vector<1x128xf32>
    %191 = math.exp %190 : vector<1x128xf32>
    %cst_52 = arith.constant 1.000000e+00 : f32
    %192 = vector.broadcast %cst_52 : f32 to vector<1x128xf32>
    %193 = arith.addf %192, %191 : vector<1x128xf32>
    %194 = arith.divf %192, %193 : vector<1x128xf32>
    %195 = vector.extract_strided_slice %194 {offsets = [0, 0], sizes = [1, 64], strides = [1, 1]} : vector<1x128xf32> to vector<1x64xf32>
    %196 = vector.extract_strided_slice %194 {offsets = [0, 64], sizes = [1, 64], strides = [1, 1]} : vector<1x128xf32> to vector<1x64xf32>
    %197 = vector.extract_strided_slice %184 {offsets = [0, 128], sizes = [1, 64], strides = [1, 1]} : vector<1x192xf32> to vector<1x64xf32>
    %198 = vector.extract_strided_slice %186 {offsets = [0, 128], sizes = [1, 64], strides = [1, 1]} : vector<1x192xf32> to vector<1x64xf32>
    %199 = arith.addf %198, %10 : vector<1x64xf32>
    %200 = arith.mulf %195, %199 : vector<1x64xf32>
    %201 = arith.addf %197, %200 : vector<1x64xf32>
    %202 = math.tanh %201 : vector<1x64xf32>
    %cst_53 = arith.constant 1.000000e+00 : f32
    %203 = vector.broadcast %cst_53 : f32 to vector<1x64xf32>
    %204 = arith.subf %203, %196 : vector<1x64xf32>
    %205 = arith.mulf %204, %202 : vector<1x64xf32>
    %206 = arith.mulf %196, %183 : vector<1x64xf32>
    %207 = arith.addf %205, %206 : vector<1x64xf32>
    %208 = tpu.concatenate %39, %63, %87, %111, %135, %159, %183, %207 in 0 : vector<1x64xf32>, vector<1x64xf32>, vector<1x64xf32>, vector<1x64xf32>, vector<1x64xf32>, vector<1x64xf32>, vector<1x64xf32>, vector<1x64xf32> -> vector<8x64xf32>
    %209 = arith.index_cast %13 : i32 to index
    %c0_54 = arith.constant 0 : index
    %210 = vector.load %arg12[%209, %c0_54] : memref<8x64xf32, #tpu.memory_space<vmem>>, vector<8x64xf32>
    tpu.vector_store %arg12[%209, %c0_54], %208 {strides = array<i32>} : memref<8x64xf32, #tpu.memory_space<vmem>>, vector<8x64xf32>,
    %c1_i32 = arith.constant 1 : i32
    %c0_55 = arith.constant 0 : index
    %c0_56 = arith.constant 0 : index
    %211 = vector.load %arg13[%c0_55, %c0_56] : memref<1x64xf32, #tpu.memory_space<vmem>>, vector<1x64xf32>
    tpu.vector_store %arg13[%c0_55, %c0_56], %207 {strides = array<i32>} : memref<1x64xf32, #tpu.memory_space<vmem>>, vector<1x64xf32>,
    %c0_57 = arith.constant 0 : index
    %c0_58 = arith.constant 0 : index
    %212 = vector.load %arg12[%c0_57, %c0_58] : memref<8x64xf32, #tpu.memory_space<vmem>>, vector<8x64xf32>
    %cst_59 = arith.constant dense<0.000000e+00> : vector<8xf32>
    %213 = vector.multi_reduction <add>, %212, %cst_59 [1] : vector<8x64xf32> to vector<8xf32>
    %214 = vector.shape_cast %213 : vector<8xf32> to vector<8x1xf32>
    %cst_60 = arith.constant 6.400000e+01 : f32
    %215 = vector.broadcast %cst_60 : f32 to vector<8x1xf32>
    %216 = arith.divf %214, %215 : vector<8x1xf32>
    %217 = vector.broadcast %216 : vector<8x1xf32> to vector<8x64xf32>
    %218 = arith.subf %212, %217 : vector<8x64xf32>
    %219 = arith.mulf %218, %218 : vector<8x64xf32>
    %cst_61 = arith.constant dense<0.000000e+00> : vector<8xf32>
    %220 = vector.multi_reduction <add>, %219, %cst_61 [1] : vector<8x64xf32> to vector<8xf32>
    %221 = vector.shape_cast %220 : vector<8xf32> to vector<8x1xf32>
    %cst_62 = arith.constant 6.400000e+01 : f32
    %222 = vector.broadcast %cst_62 : f32 to vector<8x1xf32>
    %223 = arith.divf %221, %222 : vector<8x1xf32>
    %224 = vector.broadcast %216 : vector<8x1xf32> to vector<8x64xf32>
    %225 = arith.subf %212, %224 : vector<8x64xf32>
    %cst_63 = arith.constant 9.99999974E-6 : f32
    %226 = vector.broadcast %cst_63 : f32 to vector<8x1xf32>
    %227 = arith.addf %223, %226 : vector<8x1xf32>
    %228 = math.rsqrt %227 : vector<8x1xf32>
    %229 = vector.broadcast %228 : vector<8x1xf32> to vector<8x64xf32>
    %230 = arith.mulf %225, %229 : vector<8x64xf32>
    %c0_64 = arith.constant 0 : index
    %c0_65 = arith.constant 0 : index
    %231 = vector.load %arg6[%c0_64, %c0_65] : memref<1x64xf32, #tpu.memory_space<vmem>>, vector<1x64xf32>
    %232 = vector.broadcast %231 : vector<1x64xf32> to vector<8x64xf32>
    %233 = arith.mulf %230, %232 : vector<8x64xf32>
    %c0_66 = arith.constant 0 : index
    %c0_67 = arith.constant 0 : index
    %234 = vector.load %arg7[%c0_66, %c0_67] : memref<1x64xf32, #tpu.memory_space<vmem>>, vector<1x64xf32>
    %235 = vector.broadcast %234 : vector<1x64xf32> to vector<8x64xf32>
    %236 = arith.addf %233, %235 : vector<8x64xf32>
    %c0_68 = arith.constant 0 : index
    %c0_69 = arith.constant 0 : index
    %237 = vector.load %arg8[%c0_68, %c0_69] : memref<64x128xf32, #tpu.memory_space<vmem>>, vector<64x128xf32>
    %cst_70 = arith.constant dense<0.000000e+00> : vector<8x128xf32>
    %238 = tpu.matmul %236, %237, %cst_70 {dimension_numbers = #tpu.dot_dimension_numbers<[1], [0], [0], [1], [0, 0, 1, 1], [], []>} : vector<8x64xf32>, vector<64x128xf32>, vector<8x128xf32> -> vector<8x128xf32>
    %c0_71 = arith.constant 0 : index
    %c0_72 = arith.constant 0 : index
    %239 = vector.load %arg9[%c0_71, %c0_72] : memref<1x128xf32, #tpu.memory_space<vmem>>, vector<1x128xf32>
    %240 = vector.broadcast %239 : vector<1x128xf32> to vector<8x128xf32>
    %241 = arith.addf %238, %240 : vector<8x128xf32>
    %cst_73 = arith.constant 2.000000e+01 : f32
    %242 = vector.broadcast %cst_73 : f32 to vector<8x128xf32>
    %243 = arith.cmpf ogt, %241, %242 : vector<8x128xf32>
    %244 = math.exp %241 : vector<8x128xf32>
    %245 = math.log1p %244 : vector<8x128xf32>
    %246 = arith.select %243, %241, %245 : vector<8x128xi1>, vector<8x128xf32>
    %c0_74 = arith.constant 0 : index
    %c0_75 = arith.constant 0 : index
    %247 = vector.load %arg10[%c0_74, %c0_75] : memref<8x128xf32, #tpu.memory_space<vmem>>, vector<8x128xf32>
    tpu.vector_store %arg10[%c0_74, %c0_75], %246 {strides = array<i32>} : memref<8x128xf32, #tpu.memory_space<vmem>>, vector<8x128xf32>,
    return
  }
  func.func @transform_0(%arg0: i32) -> (i32, i32) {
    %c0_i32 = arith.constant 0 : i32
    %c0_i32_0 = arith.constant 0 : i32
    return %arg0, %c0_i32 : i32, i32
  }
  func.func @transform_1(%arg0: i32) -> (i32, i32) {
    %c0_i32 = arith.constant 0 : i32
    %c0_i32_0 = arith.constant 0 : i32
    %c0_i32_1 = arith.constant 0 : i32
    return %c0_i32, %c0_i32_0 : i32, i32
  }
  func.func @transform_2(%arg0: i32) -> (i32, i32) {
    %c0_i32 = arith.constant 0 : i32
    %c0_i32_0 = arith.constant 0 : i32
    %c0_i32_1 = arith.constant 0 : i32
    return %c0_i32, %c0_i32_0 : i32, i32
  }
  func.func @transform_3(%arg0: i32) -> (i32, i32) {
    %c0_i32 = arith.constant 0 : i32
    %c0_i32_0 = arith.constant 0 : i32
    %c0_i32_1 = arith.constant 0 : i32
    return %c0_i32, %c0_i32_0 : i32, i32
  }
  func.func @transform_4(%arg0: i32) -> (i32, i32) {
    %c0_i32 = arith.constant 0 : i32
    %c0_i32_0 = arith.constant 0 : i32
    %c0_i32_1 = arith.constant 0 : i32
    return %c0_i32, %c0_i32_0 : i32, i32
  }
  func.func @transform_5(%arg0: i32) -> (i32, i32) {
    %c0_i32 = arith.constant 0 : i32
    %c0_i32_0 = arith.constant 0 : i32
    %c0_i32_1 = arith.constant 0 : i32
    return %c0_i32, %c0_i32_0 : i32, i32
  }
  func.func @transform_6(%arg0: i32) -> (i32, i32) {
    %c0_i32 = arith.constant 0 : i32
    %c0_i32_0 = arith.constant 0 : i32
    %c0_i32_1 = arith.constant 0 : i32
    return %c0_i32, %c0_i32_0 : i32, i32
  }
  func.func @transform_7(%arg0: i32) -> (i32, i32) {
    %c0_i32 = arith.constant 0 : i32
    %c0_i32_0 = arith.constant 0 : i32
    %c0_i32_1 = arith.constant 0 : i32
    return %c0_i32, %c0_i32_0 : i32, i32
  }
  func.func @transform_8(%arg0: i32) -> (i32, i32) {
    %c0_i32 = arith.constant 0 : i32
    %c0_i32_0 = arith.constant 0 : i32
    %c0_i32_1 = arith.constant 0 : i32
    return %c0_i32, %c0_i32_0 : i32, i32
  }
  func.func @transform_9(%arg0: i32) -> (i32, i32) {
    %c0_i32 = arith.constant 0 : i32
    %c0_i32_0 = arith.constant 0 : i32
    return %arg0, %c0_i32 : i32, i32
  }
}

</mosaic_0001>

<bundles_post_ra>
// kernel: gru_forward.1
= control target key start
LH: loop header
LB: loop body
LE: loop exit
PB: predicated region body
PF: predicated region fallthrough
CT: control target
= control target key end

     0   :  { %14 = vsyncpa [#allocation6], 0  ;;  %s1566_s0 = inlined_call_operand.hbm [shape: f32[8,20], index: 0, kind: input, shape index: {}]   ;;  %s1567_s1 = inlined_call_operand.hbm [shape: f32[20,192], index: 1, kind: input, shape index: {}]   ;;  %s1568_s2 = inlined_call_operand.hbm [shape: f32[64,192], index: 2, kind: input, shape index: {}]   ;;  %s1569_s3 = inlined_call_operand.vmem [shape: f32[1,192], index: 3, kind: input, shape index: {}]   ;;  %s1570_s4 = inlined_call_operand.vmem [shape: f32[1,64], index: 4, kind: input, shape index: {}]   ;;  %s1571_s5 = inlined_call_operand.vmem [shape: f32[1,64], index: 5, kind: input, shape index: {}]   ;;  %s1572_s6 = inlined_call_operand.vmem [shape: f32[1,64], index: 6, kind: input, shape index: {}]   ;;  %s1573_s7 = inlined_call_operand.hbm [shape: f32[64,128], index: 7, kind: input, shape index: {}]   ;;  %s1574_s8 = inlined_call_operand.vmem [shape: f32[1,128], index: 8, kind: input, shape index: {}]   ;;  %s1575_s9 = inlined_call_operand.hbm [shape: f32[8,128], index: 9, kind: output, shape index: {}]  }
   0x1   :  { %15 = vsyncpa [#allocation9], 0 }
   0x2   :  { %16 = vsyncpa [#allocation12], 0  ;;  %s33_s11 = sshll.u32 %s1567_s1, 4  ;;  %s34_s11 = int_to_ptr.hbm [resolvable:$true] %s33_s11 }
   0x3   :  { %17 = vsyncpa [#allocation7], 0  ;;  %s1230_s12 = smov [#allocation8]   ;;  %s23_s16 = sshll.u32 %s1566_s0, 4  ;;  %s24_s16 = int_to_ptr.hbm [resolvable:$true] %s23_s16 }
   0x4   :  { %s35_s13 = sshll.u32 %s1230_s12, 4  ;;  %s1231_s17 = smov 256   ;;  %s36_s13 = int_to_ptr.vmem [resolvable:$true] %s35_s13 }
   0x5   :  { %s1232_s18 = smov 16   ;;  %s1233_s19 = smov [#allocation5]  }
   0x6   :  { %41 = dma.hbm_to_vmem [thread:$0]  %s34_s11, 768, %s36_s13, [#allocation9], %s1231_s17, %s1231_s17, %s1232_s18  }
   0x7   :  { %s25_s20 = sshll.u32 %s1233_s19, 4  ;;  %s46_s23 = sshll.u32 %s1568_s2, 4  ;;  %s26_s20 = int_to_ptr.vmem [resolvable:$true] %s25_s20  ;;  %s47_s23 = int_to_ptr.hbm [resolvable:$true] %s46_s23 }
   0x8   :  { %28 = dma.hbm_to_vmem [thread:$0]  %s24_s16, 128, %s26_s20, [#allocation6]  }
   0x9   :  { %s67_s25 = sshll.u32 %s1573_s7, 4  ;;  %s1234_s26 = smov [#allocation10]   ;;  %s68_s25 = int_to_ptr.hbm [resolvable:$true] %s67_s25 }
   0xa   :  { %s48_s27 = sshll.u32 %s1234_s26, 4  ;;  %s1235_s0 = smov [#allocation11]   ;;  %s49_s27 = int_to_ptr.vmem [resolvable:$true] %s48_s27 }
   0xb   :  { %54 = dma.hbm_to_vmem [thread:$0]  %s47_s23, 2048, %s49_s27, [#allocation9], %s1231_s17, %s1231_s17, %s1232_s18  }
   0xc   :  { %s69_s28 = sshll.u32 %s1235_s0, 4  ;;  %s1236_s29 = smov 128   ;;  %s70_s28 = int_to_ptr.vmem [resolvable:$true] %s69_s28 }
   0xd   :  { %s1237_s30 = smov 8  }
   0xe   :  { %75 = dma.hbm_to_vmem [thread:$0]  %s68_s25, 1024, %s70_s28, [#allocation12], %s1236_s29, %s1236_s29, %s1237_s30  }
   0xf   :  { %1222 = dma.done.wait [#allocation6], 128  }
  0x10   :  { %1223 = vsyncadd [#allocation6], 4294967168 }
  0x11   :  { %1224 = dma.done.wait [#allocation9], 2816  }
  0x12   :  { %1225 = vsyncadd [#allocation9], 4294964480 }
  0x13   :  { %1226 = dma.done.wait [#allocation12], 1024  }
  0x14   :  { %1227 = vsyncadd [#allocation12], 4294966272  ;;  %vm98_vm0 = vcmask 516096   ;;  %v1238_v0 = vmov 0.0   ;;  %vm117_vm1 = vcmask 1043456   ;;  %v1304_v1 = vld [vmem:[#allocation10 + $0x70] sm:$0xff] }
  0x15   :  { %99 = vst.msk [vmem:[#allocation4] sm:$0x1] %vm98_vm0, %v1238_v0  ;;  %v1306_v2 = vld [vmem:[#allocation10 + $0x60] sm:$0xff]  ;;  %201 = vmatpush.msra.mxu2 %v1304_v1  ;;  %v105_v3 = vld [vmem:[#allocation8 + $0x20] sm:$0xf]  ;;  %v100_v8 = vld [vmem:[#allocation5] sm:$0xff] }
  0x16   :  { %v103_v4 = vld [vmem:[#allocation8 + $0x10] sm:$0xff]  ;;  %v1309_v5 = vld [vmem:[#allocation10 + $0x50] sm:$0xff]  ;;  %1002 = vmatpush.msk.msra.mxu0 %vm117_vm1, %v105_v3  ;;  %vm113_vm2 = vcmask 162816   ;;  %v1315_v9 = vld [vmem:[#allocation10 + $0x78] sm:$0xff]  ;;  %vm165_vm3 = vcmask 523264   ;;  %vm870_vm0 = vcmask 1040384  }
  0x17   :  { %202 = vmatpush.msra.mxu2 %v1306_v2  ;;  %v101_v6 = vld [vmem:[#allocation8] sm:$0xff]  ;;  %v1313_v7 = vld [vmem:[#allocation10 + $0x40] sm:$0xff]  ;;  %221 = vmatpush.msra.mxu3 %v1315_v9  ;;  %v1319_v10 = vld [vmem:[#allocation10 + $0x68] sm:$0xff]  ;;  %s990_s19 = sshll.u32 %s1575_s9, 4  ;;  %s991_s19 = int_to_ptr.hbm [resolvable:$true] %s990_s19 }
  0x18   :  { %138 = vmatpush.msra.mxu0 %v103_v4  ;;  %v1321_v11 = vld [vmem:[#allocation10 + $0x30] sm:$0xff]  ;;  %v106_v12 = vld [vmem:[#allocation8 + $0x28] sm:$0xf]  ;;  %v104_v14 = vld [vmem:[#allocation8 + $0x18] sm:$0xff] }
  0x19   :  { %203 = vmatpush.msra.mxu2 %v1309_v5  ;;  %v1325_v13 = vld [vmem:[#allocation10 + $0x58] sm:$0xff]  ;;  %v1327_v15 = vld [vmem:[#allocation10 + $0x20] sm:$0xff]  ;;  %222 = vmatpush.msra.mxu3 %v1319_v10  ;;  %v1332_v16 = vld [vmem:[#allocation10 + $0x48] sm:$0xff] }
  0x1a   :  { %139 = vmatpush.msra.mxu0 %v101_v6  ;;  %1004 = vmatpush.msk.msra.mxu1 %vm117_vm1, %v106_v12  ;;  %v102_v17 = vld [vmem:[#allocation8 + $0x8] sm:$0xff]  ;;  %v1335_v18 = vld [vmem:[#allocation10 + $0x10] sm:$0xff]  ;;  %v1342_v20 = vld [vmem:[#allocation10] sm:$0xff] }
  0x1b   :  { %204 = vmatpush.msra.mxu2 %v1313_v7  ;;  %1003 = vmatmul.msk.f32.vlgmr.msra.gmra.mxu0 %vm113_vm2, %v100_v8  ;;  %v1339_v19 = vld [vmem:[#allocation10 + $0x38] sm:$0xff]  ;;  %v1348_v22 = vld [vmem:[#allocation10 + $0x28] sm:$0xff] }
  0x1c   :  { %282 = vmatpush.msrb.mxu0 %v1304_v1  ;;  %223 = vmatpush.msra.mxu3 %v1325_v13  ;;  %v1346_v21 = vld [vmem:[#allocation4] sm:$0x1]  ;;  %v1354_v23 = vld [vmem:[#allocation10 + $0x18] sm:$0xff]  ;;  %v1360_v24 = vld [vmem:[#allocation10 + $0x8] sm:$0xff] }
  0x1d   :  { %205 = vmatpush.msra.mxu2 %v1321_v11  ;;  %158 = vmatpush.msra.mxu1 %v104_v14  ;;  %v107_v25 = vld [vmem:[%s1569_s3] sm:$0x3]  ;;  %v263_v54 = vperm.slane %v1346_v21, 0 }
  0x1e   :  { %283 = vmatpush.msrb.mxu0 %v1306_v2  ;;  %224 = vmatpush.msra.mxu3 %v1332_v16  ;;  %v109_v26 = vperm.slane %v107_v25, 0  ;;  %v110_v29 = vperm.slane %v107_v25, 1  ;;  %v1436_v40 = vld [vmem:[%s1570_s4] sm:$0x1]  ;;  %s1239_s4 = smov 64  }
  0x1f   :  { %206 = vmatpush.msra.mxu2 %v1327_v15  ;;  %159 = vmatpush.msra.mxu1 %v102_v17 }
  0x20   :  { %1005 = vmatmul.msk.f32.vlgmr.msra.gmra.mxu1 %vm113_vm2, %v100_v8  ;;  %225 = vmatpush.msra.mxu3 %v1339_v19  ;;  %vm872_vm2 = vcmask 1041408  }
  0x21   :  { %207 = vmatpush.msra.mxu2 %v1335_v18  ;;  %302 = vmatpush.msrb.mxu1 %v1315_v9 }
  0x22   :  { %284 = vmatpush.msrb.mxu0 %v1309_v5  ;;  %226 = vmatpush.msra.mxu3 %v1348_v22 }
  0x23   :  { %208 = vmatpush.msra.mxu2 %v1342_v20  ;;  %303 = vmatpush.msrb.mxu1 %v1319_v10 }
  0x24   :  { %1006 = vmatmul.msk.f32.vlgmr.msra.gmra.mxu2 %vm165_vm3, %v1346_v21  ;;  %285 = vmatpush.msrb.mxu0 %v1313_v7 }
  0x25   :  { %227 = vmatpush.msra.mxu3 %v1354_v23  ;;  %368 = vmatpush.msrb.mxu2 %v1304_v1 }
  0x26   :  { %304 = vmatpush.msrb.mxu1 %v1325_v13  ;;  %286 = vmatpush.msrb.mxu0 %v1321_v11 }
  0x27   :  { %228 = vmatpush.msra.mxu3 %v1360_v24  ;;  %369 = vmatpush.msrb.mxu2 %v1306_v2 }
  0x28   :  { %1007 = vmatmul.msk.f32.vlgmr.msra.gmra.mxu3 %vm165_vm3, %v1346_v21  ;;  %305 = vmatpush.msrb.mxu1 %v1332_v16 }
  0x29   :  { %287 = vmatpush.msrb.mxu0 %v1327_v15  ;;  %388 = vmatpush.msrb.mxu3 %v1315_v9 }
  0x2a   :  { %306 = vmatpush.msrb.mxu1 %v1339_v19  ;;  %370 = vmatpush.msrb.mxu2 %v1309_v5 }
  0x2b   :  { %288 = vmatpush.msrb.mxu0 %v1335_v18  ;;  %389 = vmatpush.msrb.mxu3 %v1319_v10 }
  0x2c   :  { %307 = vmatpush.msrb.mxu1 %v1348_v22  ;;  %371 = vmatpush.msrb.mxu2 %v1313_v7 }
  0x2d   :  { %289 = vmatpush.msrb.mxu0 %v1342_v20  ;;  %390 = vmatpush.msrb.mxu3 %v1325_v13 }
  0x2e   :  { %308 = vmatpush.msrb.mxu1 %v1354_v23  ;;  %372 = vmatpush.msrb.mxu2 %v1321_v11 }
  0x2f   :  { %391 = vmatpush.msrb.mxu3 %v1332_v16  ;;  %454 = vmatpush.msra.mxu0 %v1304_v1 }
  0x30   :  { %309 = vmatpush.msrb.mxu1 %v1360_v24  ;;  %373 = vmatpush.msrb.mxu2 %v1327_v15 }
  0x31   :  { %392 = vmatpush.msrb.mxu3 %v1339_v19  ;;  %455 = vmatpush.msra.mxu0 %v1306_v2 }
  0x32   :  { %474 = vmatpush.msra.mxu1 %v1315_v9  ;;  %374 = vmatpush.msrb.mxu2 %v1335_v18 }
  0x33   :  { %393 = vmatpush.msrb.mxu3 %v1348_v22  ;;  %456 = vmatpush.msra.mxu0 %v1309_v5 }
  0x34   :  { %475 = vmatpush.msra.mxu1 %v1319_v10  ;;  %375 = vmatpush.msrb.mxu2 %v1342_v20 }
  0x35   :  { %394 = vmatpush.msrb.mxu3 %v1354_v23  ;;  %457 = vmatpush.msra.mxu0 %v1313_v7 }
  0x36   :  { %476 = vmatpush.msra.mxu1 %v1325_v13  ;;  %540 = vmatpush.msra.mxu2 %v1304_v1 }
  0x37   :  { %395 = vmatpush.msrb.mxu3 %v1360_v24  ;;  %458 = vmatpush.msra.mxu0 %v1321_v11 }
  0x38   :  { %477 = vmatpush.msra.mxu1 %v1332_v16  ;;  %541 = vmatpush.msra.mxu2 %v1306_v2 }
  0x39   :  { %560 = vmatpush.msra.mxu3 %v1315_v9  ;;  %459 = vmatpush.msra.mxu0 %v1327_v15 }
  0x3a   :  { %478 = vmatpush.msra.mxu1 %v1339_v19  ;;  %542 = vmatpush.msra.mxu2 %v1309_v5 }
  0x3b   :  { %561 = vmatpush.msra.mxu3 %v1319_v10  ;;  %460 = vmatpush.msra.mxu0 %v1335_v18 }
  0x3c   :  { %479 = vmatpush.msra.mxu1 %v1348_v22  ;;  %543 = vmatpush.msra.mxu2 %v1313_v7 }
  0x3d   :  { %562 = vmatpush.msra.mxu3 %v1325_v13  ;;  %461 = vmatpush.msra.mxu0 %v1342_v20 }
  0x3e   :  { %480 = vmatpush.msra.mxu1 %v1354_v23  ;;  %544 = vmatpush.msra.mxu2 %v1321_v11 }
  0x3f   :  { %563 = vmatpush.msra.mxu3 %v1332_v16 }
  0x40   :  { %481 = vmatpush.msra.mxu1 %v1360_v24  ;;  %545 = vmatpush.msra.mxu2 %v1327_v15 }
  0x41   :  { %564 = vmatpush.msra.mxu3 %v1339_v19 }
  0x42   :  { %546 = vmatpush.msra.mxu2 %v1335_v18 }
  0x43   :  { %565 = vmatpush.msra.mxu3 %v1348_v22 }
  0x44   :  { %547 = vmatpush.msra.mxu2 %v1342_v20 }
  0x45   :  { %566 = vmatpush.msra.mxu3 %v1354_v23 }
  0x47   :  { %567 = vmatpush.msra.mxu3 %v1360_v24 }
  0x98   :  { %v141_v27 = vpop.f32.mrf.mxu0 }
  0x99   :  { %v1429_v28 = vadd.f32 %v141_v27, %v109_v26 }
  0x9d   :  { %v161_v30 = vpop.f32.mrf.mxu1 }
  0x9e   :  { %v162_v31 = vadd.f32 %v161_v30, %v110_v29 }
  0xa0   :  { %166 = vst.msk [vmem:[#allocation2 + $0x8] sm:$0xff] %vm165_vm3, %v162_v31 }
  0xa7   :  { %v210_v32 = vpop.f32.mrf.mxu2  ;;  %v1439_v49 = vld [vmem:[#allocation2 + $0x8] sm:$0xff] }
  0xa8   :  { %v233_v33 = vadd.f32 %v210_v32, %v1429_v28 }
  0xaa   :  { %v1008_v34 = vmul.f32 -1.442695, %v233_v33 }
  0xab   :  { %v230_v41 = vpop.f32.mrf.mxu3 }
  0xac   :  { %1046 = vpow2.f32 %v1008_v34  ;;  %v253_v46 = vadd.f32 %v230_v41, %v1436_v40 }
  0xb2   :  { %v1047_v35 = vpop.eup %1046 }
  0xb3   :  { %v237_v36 = vadd.f32 1.0, %v1047_v35 }
  0xb5   :  { %1048 = vrcp.f32 %v237_v36  ;;  %v249_v42 = vand.u32 2147483648, %v237_v36  ;;  %v247_v44 = vand.u32 2147483647, %v237_v36  ;;  %vm243_vm5 = vweird.f32 %v237_v36 }
  0xb7   :  { %v250_v47 = vor.u32 1.1754944e-38, %v249_v42  ;;  %vm248_vm7 = vcmp.eq.f32.partialorder %v247_v44, 8.507059e+37 }
  0xbb   :  { %v1049_v37 = vpop.eup %1048 }
  0xbc   :  { %v239_v38 = vmul.f32 %v1049_v37, %v237_v36  ;;  %vm244_vm4 = vweird.f32 %v1049_v37 }
  0xbd   :  { %vm245_vm6 = vmor %vm243_vm5, %vm244_vm4 }
  0xbe   :  { %v240_v39 = vsub.f32 1.0, %v239_v38 }
  0xc0   :  { %v241_v43 = vmul.f32 %v1049_v37, %v240_v39 }
  0xc2   :  { %v242_v45 = vadd.f32 %v1049_v37, %v241_v43 }
  0xc4   :  { %v246_v48 = vsel %vm245_vm6, %v1049_v37, %v242_v45 }
  0xc5   :  { %v251_v50 = vsel %vm248_vm7, %v250_v47, %v246_v48 }
  0xc6   :  { %v254_v51 = vmul.f32 %v253_v46, %v251_v50  ;;  %v257_v56 = vsub.f32 1.0, %v251_v50 }
  0xc8   :  { %v255_v52 = vadd.f32 %v254_v51, %v1439_v49 }
  0xca   :  { %1050 = vtanh.f32 %v255_v52 }
  0xd0   :  { %v1051_v53 = vpop.eup %1050 }
  0xd1   :  { %259 = vrot.lane.b32.xlu0 %v1051_v53, %s1239_s4 }
  0xd9   :  { %264 = vrot.lane.b32.xlu0 %v263_v54, %s1239_s4 }
 0x143   :  { %v260_v55 = vpop.permute.xlu0 %259 }
 0x144   :  { %v262_v58 = vmul.f32 %v260_v55, %v257_v56 }
 0x14b   :  { %v265_v57 = vpop.permute.xlu0 %264 }
 0x14c   :  { %v267_v59 = vmul.f32 %v265_v57, %v251_v50 }
 0x14e   :  { %v1445_v60 = vadd.f32 %v267_v59, %v262_v58 }
 0x150   :  { %270 = vrot.lane.b32.xlu1 %v1445_v60, %s1239_s4  ;;  %v350_v38 = vrot.slane %v1445_v60, 7 }
 0x1c2   :  { %v271_v61 = vpop.permute.xlu1 %270 }
 0x1c3   :  { %1009 = vmatmul.msk.f32.vlgmr.msrb.gmra.mxu0 %vm165_vm3, %v271_v61  ;;  %1010 = vmatmul.msk.f32.vlgmr.msrb.gmra.mxu1 %vm165_vm3, %v271_v61 }
 0x1c4   :  { %626 = vmatpush.msrb.mxu0 %v1304_v1  ;;  %646 = vmatpush.msrb.mxu1 %v1315_v9 }
 0x1c6   :  { %627 = vmatpush.msrb.mxu0 %v1306_v2  ;;  %647 = vmatpush.msrb.mxu1 %v1319_v10 }
 0x1c8   :  { %628 = vmatpush.msrb.mxu0 %v1309_v5  ;;  %648 = vmatpush.msrb.mxu1 %v1325_v13 }
 0x1ca   :  { %629 = vmatpush.msrb.mxu0 %v1313_v7  ;;  %649 = vmatpush.msrb.mxu1 %v1332_v16 }
 0x1cc   :  { %630 = vmatpush.msrb.mxu0 %v1321_v11  ;;  %650 = vmatpush.msrb.mxu1 %v1339_v19 }
 0x1ce   :  { %631 = vmatpush.msrb.mxu0 %v1327_v15  ;;  %651 = vmatpush.msrb.mxu1 %v1348_v22 }
 0x1d0   :  { %632 = vmatpush.msrb.mxu0 %v1335_v18  ;;  %652 = vmatpush.msrb.mxu1 %v1354_v23 }
 0x1d2   :  { %633 = vmatpush.msrb.mxu0 %v1342_v20  ;;  %653 = vmatpush.msrb.mxu1 %v1360_v24 }
 0x240   :  { %v291_v62 = vpop.f32.mrf.mxu0  ;;  %v311_v14 = vpop.f32.mrf.mxu1 }
 0x241   :  { %v315_v63 = vrot.slane %v291_v62, 7  ;;  %v337_v27 = vadd.f32 %v311_v14, %v1436_v40 }
 0x243   :  { %v317_v0 = vadd.f32 %v315_v63, %v1429_v28  ;;  %v339_v32 = vrot.slane %v337_v27, 7 }
 0x245   :  { %v1011_v3 = vmul.f32 -1.442695, %v317_v0 }
 0x247   :  { %1052 = vpow2.f32 %v1011_v3 }
 0x24d   :  { %v1053_v4 = vpop.eup %1052 }
 0x24e   :  { %v321_v6 = vadd.f32 1.0, %v1053_v4 }
 0x250   :  { %1054 = vrcp.f32 %v321_v6  ;;  %v333_v21 = vand.u32 2147483648, %v321_v6  ;;  %v331_v26 = vand.u32 2147483647, %v321_v6  ;;  %vm327_vm9 = vweird.f32 %v321_v6 }
 0x252   :  { %v334_v30 = vor.u32 1.1754944e-38, %v333_v21  ;;  %vm332_vm11 = vcmp.eq.f32.partialorder %v331_v26, 8.507059e+37 }
 0x256   :  { %v1055_v8 = vpop.eup %1054 }
 0x257   :  { %v323_v12 = vmul.f32 %v1055_v8, %v321_v6  ;;  %vm328_vm8 = vweird.f32 %v1055_v8 }
 0x258   :  { %vm329_vm10 = vmor %vm327_vm9, %vm328_vm8  ;;  %vm874_vm8 = vcmask 1042432  }
 0x259   :  { %v324_v17 = vsub.f32 1.0, %v323_v12 }
 0x25b   :  { %v325_v25 = vmul.f32 %v1055_v8, %v324_v17 }
 0x25d   :  { %v326_v29 = vadd.f32 %v1055_v8, %v325_v25 }
 0x25f   :  { %v330_v31 = vsel %vm329_vm10, %v1055_v8, %v326_v29 }
 0x260   :  { %v335_v33 = vsel %vm332_vm11, %v334_v30, %v330_v31 }
 0x261   :  { %v341_v34 = vmul.f32 %v339_v32, %v335_v33  ;;  %v344_v37 = vsub.f32 1.0, %v335_v33  ;;  %v352_v42 = vmul.f32 %v350_v38, %v335_v33 }
 0x263   :  { %v342_v35 = vadd.f32 %v341_v34, %v1439_v49 }
 0x265   :  { %1056 = vtanh.f32 %v342_v35 }
 0x26b   :  { %v1057_v36 = vpop.eup %1056 }
 0x26c   :  { %346 = vrot.lane.b32.xlu1 %v1057_v36, %s1239_s4 }
 0x2de   :  { %v347_v39 = vpop.permute.xlu1 %346 }
 0x2df   :  { %v349_v41 = vmul.f32 %v347_v39, %v344_v37 }
 0x2e1   :  { %v353_v43 = vadd.f32 %v352_v42, %v349_v41 }
 0x2e3   :  { %v355_v44 = vrot.slane %v353_v43, 1  ;;  %v436_v4 = vrot.slane %v353_v43, 7  ;;  %v871_v29 = vsel %vm870_vm0, %v1445_v60, %v353_v43  ;;  %vm877_vm0 = vcmask 1044480  }
 0x2e5   :  { %356 = vrot.lane.b32.xlu2 %v355_v44, %s1239_s4 }
 0x33f   :  { %v357_v45 = vpop.permute.xlu2 %356 }
 0x340   :  { %1012 = vmatmul.msk.f32.vlgmr.msrb.gmra.mxu2 %vm165_vm3, %v357_v45  ;;  %1013 = vmatmul.msk.f32.vlgmr.msrb.gmra.mxu3 %vm165_vm3, %v357_v45 }
 0x341   :  { %712 = vmatpush.msrb.mxu2 %v1304_v1  ;;  %732 = vmatpush.msrb.mxu3 %v1315_v9 }
 0x343   :  { %713 = vmatpush.msrb.mxu2 %v1306_v2  ;;  %733 = vmatpush.msrb.mxu3 %v1319_v10 }
 0x345   :  { %714 = vmatpush.msrb.mxu2 %v1309_v5  ;;  %734 = vmatpush.msrb.mxu3 %v1325_v13 }
 0x347   :  { %715 = vmatpush.msrb.mxu2 %v1313_v7  ;;  %735 = vmatpush.msrb.mxu3 %v1332_v16 }
 0x349   :  { %716 = vmatpush.msrb.mxu2 %v1321_v11  ;;  %736 = vmatpush.msrb.mxu3 %v1339_v19 }
 0x34b   :  { %717 = vmatpush.msrb.mxu2 %v1327_v15  ;;  %737 = vmatpush.msrb.mxu3 %v1348_v22 }
 0x34d   :  { %718 = vmatpush.msrb.mxu2 %v1335_v18  ;;  %738 = vmatpush.msrb.mxu3 %v1354_v23 }
 0x34f   :  { %719 = vmatpush.msrb.mxu2 %v1342_v20  ;;  %739 = vmatpush.msrb.mxu3 %v1360_v24 }
 0x3c3   :  { %v377_v46 = vpop.f32.mrf.mxu2  ;;  %v397_v55 = vpop.f32.mrf.mxu3 }
 0x3c4   :  { %v401_v47 = vrot.slane %v377_v46, 6  ;;  %v423_v61 = vadd.f32 %v397_v55, %v1436_v40 }
 0x3c6   :  { %v403_v48 = vadd.f32 %v401_v47, %v1429_v28  ;;  %v425_v3 = vrot.slane %v423_v61, 6 }
 0x3c8   :  { %v1014_v50 = vmul.f32 -1.442695, %v403_v48 }
 0x3ca   :  { %1058 = vpow2.f32 %v1014_v50 }
 0x3d0   :  { %v1059_v51 = vpop.eup %1058 }
 0x3d1   :  { %v407_v52 = vadd.f32 1.0, %v1059_v51 }
 0x3d3   :  { %1060 = vrcp.f32 %v407_v52  ;;  %v419_v57 = vand.u32 2147483648, %v407_v52  ;;  %v417_v59 = vand.u32 2147483647, %v407_v52  ;;  %vm413_vm13 = vweird.f32 %v407_v52 }
 0x3d5   :  { %v420_v63 = vor.u32 1.1754944e-38, %v419_v57  ;;  %vm418_vm15 = vcmp.eq.f32.partialorder %v417_v59, 8.507059e+37 }
 0x3d9   :  { %v1061_v53 = vpop.eup %1060 }
 0x3da   :  { %v409_v54 = vmul.f32 %v1061_v53, %v407_v52  ;;  %vm414_vm12 = vweird.f32 %v1061_v53 }
 0x3db   :  { %vm415_vm14 = vmor %vm413_vm13, %vm414_vm12 }
 0x3dc   :  { %v410_v56 = vsub.f32 1.0, %v409_v54 }
 0x3de   :  { %v411_v58 = vmul.f32 %v1061_v53, %v410_v56 }
 0x3e0   :  { %v412_v62 = vadd.f32 %v1061_v53, %v411_v58 }
 0x3e2   :  { %v416_v0 = vsel %vm415_vm14, %v1061_v53, %v412_v62 }
 0x3e3   :  { %v421_v6 = vsel %vm418_vm15, %v420_v63, %v416_v0 }
 0x3e4   :  { %v427_v8 = vmul.f32 %v425_v3, %v421_v6  ;;  %v438_v12 = vmul.f32 %v436_v4, %v421_v6  ;;  %v430_v21 = vsub.f32 1.0, %v421_v6 }
 0x3e6   :  { %v428_v14 = vadd.f32 %v427_v8, %v1439_v49 }
 0x3e8   :  { %1062 = vtanh.f32 %v428_v14 }
 0x3ee   :  { %v1063_v17 = vpop.eup %1062 }
 0x3ef   :  { %432 = vrot.lane.b32.xlu2 %v1063_v17, %s1239_s4 }
 0x449   :  { %v433_v25 = vpop.permute.xlu2 %432 }
 0x44a   :  { %v435_v26 = vmul.f32 %v433_v25, %v430_v21 }
 0x44c   :  { %v439_v27 = vadd.f32 %v438_v12, %v435_v26 }
 0x44e   :  { %v873_v30 = vsel %vm872_vm2, %v871_v29, %v439_v27  ;;  %v441_v31 = vrot.slane %v439_v27, 2  ;;  %v522_v34 = vrot.slane %v439_v27, 7 }
 0x450   :  { %442 = vrot.lane.b32.xlu0 %v441_v31, %s1239_s4 }
 0x4c2   :  { %v443_v32 = vpop.permute.xlu0 %442 }
 0x4c3   :  { %1015 = vmatmul.msk.f32.vlgmr.msra.gmra.mxu0 %vm165_vm3, %v443_v32  ;;  %1016 = vmatmul.msk.f32.vlgmr.msra.gmra.mxu1 %vm165_vm3, %v443_v32 }
 0x4c4   :  { %798 = vmatpush.msra.mxu0 %v1304_v1  ;;  %818 = vmatpush.msra.mxu1 %v1315_v9 }
 0x4c6   :  { %799 = vmatpush.msra.mxu0 %v1306_v2  ;;  %819 = vmatpush.msra.mxu1 %v1319_v10 }
 0x4c8   :  { %800 = vmatpush.msra.mxu0 %v1309_v5  ;;  %820 = vmatpush.msra.mxu1 %v1325_v13 }
 0x4ca   :  { %801 = vmatpush.msra.mxu0 %v1313_v7  ;;  %821 = vmatpush.msra.mxu1 %v1332_v16 }
 0x4cc   :  { %802 = vmatpush.msra.mxu0 %v1321_v11  ;;  %822 = vmatpush.msra.mxu1 %v1339_v19 }
 0x4ce   :  { %803 = vmatpush.msra.mxu0 %v1327_v15  ;;  %823 = vmatpush.msra.mxu1 %v1348_v22 }
 0x4d0   :  { %804 = vmatpush.msra.mxu0 %v1335_v18  ;;  %824 = vmatpush.msra.mxu1 %v1354_v23 }
 0x4d2   :  { %805 = vmatpush.msra.mxu0 %v1342_v20  ;;  %825 = vmatpush.msra.mxu1 %v1360_v24 }
 0x540   :  { %v463_v1 = vpop.f32.mrf.mxu0  ;;  %v483_v15 = vpop.f32.mrf.mxu1 }
 0x541   :  { %v487_v2 = vrot.slane %v463_v1, 5  ;;  %v509_v20 = vadd.f32 %v483_v15, %v1436_v40 }
 0x543   :  { %v489_v5 = vadd.f32 %v487_v2, %v1429_v28  ;;  %v511_v33 = vrot.slane %v509_v20, 5 }
 0x545   :  { %v1017_v7 = vmul.f32 -1.442695, %v489_v5 }
 0x547   :  { %1064 = vpow2.f32 %v1017_v7 }
 0x54d   :  { %v1065_v9 = vpop.eup %1064 }
 0x54e   :  { %v493_v10 = vadd.f32 1.0, %v1065_v9 }
 0x550   :  { %1066 = vrcp.f32 %v493_v10  ;;  %v505_v18 = vand.u32 2147483648, %v493_v10  ;;  %v503_v22 = vand.u32 2147483647, %v493_v10  ;;  %vm499_vm5 = vweird.f32 %v493_v10 }
 0x552   :  { %v506_v24 = vor.u32 1.1754944e-38, %v505_v18  ;;  %vm504_vm7 = vcmp.eq.f32.partialorder %v503_v22, 8.507059e+37 }
 0x556   :  { %v1067_v11 = vpop.eup %1066 }
 0x557   :  { %v495_v13 = vmul.f32 %v1067_v11, %v493_v10  ;;  %vm500_vm4 = vweird.f32 %v1067_v11 }
 0x558   :  { %vm501_vm6 = vmor %vm499_vm5, %vm500_vm4 }
 0x559   :  { %v496_v16 = vsub.f32 1.0, %v495_v13 }
 0x55b   :  { %v497_v19 = vmul.f32 %v1067_v11, %v496_v16 }
 0x55d   :  { %v498_v23 = vadd.f32 %v1067_v11, %v497_v19 }
 0x55f   :  { %v502_v60 = vsel %vm501_vm6, %v1067_v11, %v498_v23 }
 0x560   :  { %v507_v35 = vsel %vm504_vm7, %v506_v24, %v502_v60  ;;  %vm879_vm7 = vcmask 1045504  }
 0x561   :  { %v513_v36 = vmul.f32 %v511_v33, %v507_v35  ;;  %v524_v37 = vmul.f32 %v522_v34, %v507_v35  ;;  %v516_v41 = vsub.f32 1.0, %v507_v35 }
 0x563   :  { %v514_v38 = vadd.f32 %v513_v36, %v1439_v49 }
 0x565   :  { %1068 = vtanh.f32 %v514_v38 }
 0x56b   :  { %v1069_v39 = vpop.eup %1068 }
 0x56c   :  { %518 = vrot.lane.b32.xlu1 %v1069_v39, %s1239_s4 }
 0x5de   :  { %v519_v42 = vpop.permute.xlu1 %518 }
 0x5df   :  { %v521_v43 = vmul.f32 %v519_v42, %v516_v41 }
 0x5e1   :  { %v525_v44 = vadd.f32 %v524_v37, %v521_v43 }
 0x5e3   :  { %v875_v45 = vsel %vm874_vm8, %v873_v30, %v525_v44  ;;  %v527_v46 = vrot.slane %v525_v44, 3  ;;  %v608_v8 = vrot.slane %v525_v44, 7 }
 0x5e5   :  { %528 = vrot.lane.b32.xlu2 %v527_v46, %s1239_s4 }
 0x63f   :  { %v529_v47 = vpop.permute.xlu2 %528 }
 0x640   :  { %1018 = vmatmul.msk.f32.vlgmr.msra.gmra.mxu2 %vm165_vm3, %v529_v47  ;;  %1019 = vmatmul.msk.f32.vlgmr.msra.gmra.mxu3 %vm165_vm3, %v529_v47 }
 0x6c3   :  { %v549_v48 = vpop.f32.mrf.mxu2  ;;  %v569_v57 = vpop.f32.mrf.mxu3 }
 0x6c4   :  { %v573_v50 = vrot.slane %v549_v48, 4  ;;  %v595_v63 = vadd.f32 %v569_v57, %v1436_v40 }
 0x6c6   :  { %v575_v51 = vadd.f32 %v573_v50, %v1429_v28  ;;  %v597_v6 = vrot.slane %v595_v63, 4 }
 0x6c8   :  { %v1020_v52 = vmul.f32 -1.442695, %v575_v51 }
 0x6ca   :  { %1070 = vpow2.f32 %v1020_v52 }
 0x6d0   :  { %v1071_v53 = vpop.eup %1070 }
 0x6d1   :  { %v579_v54 = vadd.f32 1.0, %v1071_v53 }
 0x6d3   :  { %1072 = vrcp.f32 %v579_v54  ;;  %v591_v59 = vand.u32 2147483648, %v579_v54  ;;  %v589_v62 = vand.u32 2147483647, %v579_v54  ;;  %vm585_vm10 = vweird.f32 %v579_v54 }
 0x6d5   :  { %v592_v3 = vor.u32 1.1754944e-38, %v591_v59  ;;  %vm590_vm12 = vcmp.eq.f32.partialorder %v589_v62, 8.507059e+37 }
 0x6d9   :  { %v1073_v55 = vpop.eup %1072 }
 0x6da   :  { %v581_v56 = vmul.f32 %v1073_v55, %v579_v54  ;;  %vm586_vm9 = vweird.f32 %v1073_v55 }
 0x6db   :  { %vm587_vm11 = vmor %vm585_vm10, %vm586_vm9 }
 0x6dc   :  { %v582_v58 = vsub.f32 1.0, %v581_v56 }
 0x6de   :  { %v583_v61 = vmul.f32 %v1073_v55, %v582_v58 }
 0x6e0   :  { %v584_v0 = vadd.f32 %v1073_v55, %v583_v61 }
 0x6e2   :  { %v588_v4 = vsel %vm587_vm11, %v1073_v55, %v584_v0 }
 0x6e3   :  { %v593_v12 = vsel %vm590_vm12, %v592_v3, %v588_v4  ;;  %vm881_vm12 = vcmask 1046528  }
 0x6e4   :  { %v599_v14 = vmul.f32 %v597_v6, %v593_v12  ;;  %v610_v17 = vmul.f32 %v608_v8, %v593_v12  ;;  %v602_v26 = vsub.f32 1.0, %v593_v12 }
 0x6e6   :  { %v600_v21 = vadd.f32 %v599_v14, %v1439_v49 }
 0x6e8   :  { %1074 = vtanh.f32 %v600_v21 }
 0x6ee   :  { %v1075_v25 = vpop.eup %1074 }
 0x6ef   :  { %604 = vrot.lane.b32.xlu0 %v1075_v25, %s1239_s4 }
 0x761   :  { %v605_v27 = vpop.permute.xlu0 %604 }
 0x762   :  { %v607_v29 = vmul.f32 %v605_v27, %v602_v26 }
 0x764   :  { %v611_v30 = vadd.f32 %v610_v17, %v607_v29 }
 0x766   :  { %v876_v31 = vsel %vm117_vm1, %v875_v45, %v611_v30  ;;  %v613_v32 = vrot.slane %v611_v30, 4  ;;  %v694_v35 = vrot.slane %v611_v30, 7 }
 0x768   :  { %614 = vrot.lane.b32.xlu1 %v613_v32, %s1239_s4 }
 0x7da   :  { %v615_v1 = vpop.permute.xlu1 %614 }
 0x7db   :  { %1021 = vmatmul.msk.f32.vlgmr.msrb.gmra.mxu0 %vm165_vm3, %v615_v1  ;;  %1022 = vmatmul.msk.f32.vlgmr.msrb.gmra.mxu1 %vm165_vm3, %v615_v1 }
 0x858   :  { %v635_v2 = vpop.f32.mrf.mxu0  ;;  %v655_v16 = vpop.f32.mrf.mxu1 }
 0x859   :  { %v659_v5 = vrot.slane %v635_v2, 3  ;;  %v681_v23 = vadd.f32 %v655_v16, %v1436_v40 }
 0x85b   :  { %v661_v7 = vadd.f32 %v659_v5, %v1429_v28  ;;  %v683_v34 = vrot.slane %v681_v23, 3 }
 0x85d   :  { %v1023_v9 = vmul.f32 -1.442695, %v661_v7 }
 0x85f   :  { %1076 = vpow2.f32 %v1023_v9 }
 0x865   :  { %v1077_v10 = vpop.eup %1076 }
 0x866   :  { %v665_v11 = vadd.f32 1.0, %v1077_v10 }
 0x868   :  { %1078 = vrcp.f32 %v665_v11  ;;  %v677_v19 = vand.u32 2147483648, %v665_v11  ;;  %v675_v20 = vand.u32 2147483647, %v665_v11  ;;  %vm671_vm13 = vweird.f32 %v665_v11 }
 0x86a   :  { %v678_v60 = vor.u32 1.1754944e-38, %v677_v19  ;;  %vm676_vm15 = vcmp.eq.f32.partialorder %v675_v20, 8.507059e+37 }
 0x86e   :  { %v1079_v13 = vpop.eup %1078 }
 0x86f   :  { %v667_v15 = vmul.f32 %v1079_v13, %v665_v11  ;;  %vm672_vm1 = vweird.f32 %v1079_v13 }
 0x870   :  { %vm673_vm14 = vmor %vm671_vm13, %vm672_vm1  ;;  %vm892_vm1 = vcmask 523271  }
 0x871   :  { %v668_v18 = vsub.f32 1.0, %v667_v15 }
 0x873   :  { %v669_v22 = vmul.f32 %v1079_v13, %v668_v18 }
 0x875   :  { %v670_v24 = vadd.f32 %v1079_v13, %v669_v22 }
 0x877   :  { %v674_v33 = vsel %vm673_vm14, %v1079_v13, %v670_v24 }
 0x878   :  { %v679_v36 = vsel %vm676_vm15, %v678_v60, %v674_v33 }
 0x879   :  { %v685_v37 = vmul.f32 %v683_v34, %v679_v36  ;;  %v696_v38 = vmul.f32 %v694_v35, %v679_v36  ;;  %v688_v42 = vsub.f32 1.0, %v679_v36 }
 0x87b   :  { %v686_v39 = vadd.f32 %v685_v37, %v1439_v49 }
 0x87d   :  { %1080 = vtanh.f32 %v686_v39 }
 0x883   :  { %v1081_v41 = vpop.eup %1080 }
 0x884   :  { %690 = vrot.lane.b32.xlu2 %v1081_v41, %s1239_s4 }
 0x8de   :  { %v691_v43 = vpop.permute.xlu2 %690 }
 0x8df   :  { %v693_v44 = vmul.f32 %v691_v43, %v688_v42 }
 0x8e1   :  { %v697_v45 = vadd.f32 %v696_v38, %v693_v44 }
 0x8e3   :  { %v699_v46 = vrot.slane %v697_v45, 5  ;;  %v878_v47 = vsel %vm877_vm0, %v876_v31, %v697_v45  ;;  %v780_v12 = vrot.slane %v697_v45, 7 }
 0x8e5   :  { %700 = vrot.lane.b32.xlu0 %v699_v46, %s1239_s4 }
 0x957   :  { %v701_v48 = vpop.permute.xlu0 %700 }
 0x958   :  { %1024 = vmatmul.msk.f32.vlgmr.msrb.gmra.mxu2 %vm165_vm3, %v701_v48  ;;  %1025 = vmatmul.msk.f32.vlgmr.msrb.gmra.mxu3 %vm165_vm3, %v701_v48 }
 0x9db   :  { %v721_v50 = vpop.f32.mrf.mxu2  ;;  %v741_v58 = vpop.f32.mrf.mxu3 }
 0x9dc   :  { %v745_v51 = vrot.slane %v721_v50, 2  ;;  %v767_v0 = vadd.f32 %v741_v58, %v1436_v40  ;;  %v1240_v50 = vmov 64.0  }
 0x9de   :  { %v747_v52 = vadd.f32 %v745_v51, %v1429_v28  ;;  %v769_v8 = vrot.slane %v767_v0, 2  ;;  %v940_v0 = vld [vmem:[#allocation11 + $0x30] sm:$0xff] }
 0x9e0   :  { %v1026_v53 = vmul.f32 -1.442695, %v747_v52 }
 0x9e2   :  { %1082 = vpow2.f32 %v1026_v53 }
 0x9e8   :  { %v1083_v54 = vpop.eup %1082 }
 0x9e9   :  { %v751_v55 = vadd.f32 1.0, %v1083_v54 }
 0x9eb   :  { %1084 = vrcp.f32 %v751_v55  ;;  %v763_v61 = vand.u32 2147483648, %v751_v55  ;;  %v761_v63 = vand.u32 2147483647, %v751_v55  ;;  %vm757_vm4 = vweird.f32 %v751_v55 }
 0x9ed   :  { %v764_v4 = vor.u32 1.1754944e-38, %v763_v61  ;;  %vm762_vm6 = vcmp.eq.f32.partialorder %v761_v63, 8.507059e+37  ;;  %v941_v63 = vld [vmem:[#allocation11 + $0x38] sm:$0xff] }
 0x9ee   :  { %957 = vmatpush.msra.mxu2 %v941_v63 }
 0x9f0   :  { %958 = vmatpush.msra.mxu2 %v940_v0 }
 0x9f1   :  { %v1085_v56 = vpop.eup %1084 }
 0x9f2   :  { %v753_v57 = vmul.f32 %v1085_v56, %v751_v55  ;;  %vm758_vm2 = vweird.f32 %v1085_v56 }
 0x9f3   :  { %vm759_vm5 = vmor %vm757_vm4, %vm758_vm2 }
 0x9f4   :  { %v754_v59 = vsub.f32 1.0, %v753_v57 }
 0x9f6   :  { %v755_v62 = vmul.f32 %v1085_v56, %v754_v59 }
 0x9f8   :  { %v756_v3 = vadd.f32 %v1085_v56, %v755_v62 }
 0x9fa   :  { %v760_v6 = vsel %vm759_vm5, %v1085_v56, %v756_v3  ;;  %v939_v3 = vld [vmem:[#allocation11 + $0x28] sm:$0xff] }
 0x9fb   :  { %v765_v14 = vsel %vm762_vm6, %v764_v4, %v760_v6  ;;  %959 = vmatpush.msra.mxu2 %v939_v3  ;;  %v938_v4 = vld [vmem:[#allocation11 + $0x20] sm:$0xff]  ;;  %v937_v6 = vld [vmem:[#allocation11 + $0x18] sm:$0xff] }
 0x9fc   :  { %v771_v17 = vmul.f32 %v769_v8, %v765_v14  ;;  %v782_v21 = vmul.f32 %v780_v12, %v765_v14  ;;  %v774_v27 = vsub.f32 1.0, %v765_v14  ;;  %v936_v8 = vld [vmem:[#allocation11 + $0x10] sm:$0xff]  ;;  %v935_v12 = vld [vmem:[#allocation11 + $0x8] sm:$0xff]  ;;  %v934_v14 = vld [vmem:[#allocation11] sm:$0xff] }
 0x9fd   :  { %960 = vmatpush.msra.mxu2 %v938_v4 }
 0x9fe   :  { %v772_v25 = vadd.f32 %v771_v17, %v1439_v49 }
 0x9ff   :  { %961 = vmatpush.msra.mxu2 %v937_v6 }
 0xa00   :  { %1086 = vtanh.f32 %v772_v25 }
 0xa01   :  { %962 = vmatpush.msra.mxu2 %v936_v8 }
 0xa03   :  { %963 = vmatpush.msra.mxu2 %v935_v12 }
 0xa05   :  { %964 = vmatpush.msra.mxu2 %v934_v14 }
 0xa06   :  { %v1087_v26 = vpop.eup %1086 }
 0xa07   :  { %776 = vrot.lane.b32.xlu1 %v1087_v26, %s1239_s4 }
 0xa79   :  { %v777_v29 = vpop.permute.xlu1 %776 }
 0xa7a   :  { %v779_v30 = vmul.f32 %v777_v29, %v774_v27 }
 0xa7c   :  { %v783_v31 = vadd.f32 %v782_v21, %v779_v30 }
 0xa7e   :  { %v785_v32 = vrot.slane %v783_v31, 6  ;;  %v880_v1 = vsel %vm879_vm7, %v878_v47, %v783_v31  ;;  %v866_v35 = vrot.slane %v783_v31, 7 }
 0xa80   :  { %786 = vrot.lane.b32.xlu2 %v785_v32, %s1239_s4 }
 0xada   :  { %v787_v2 = vpop.permute.xlu2 %786 }
 0xadb   :  { %1027 = vmatmul.msk.f32.vlgmr.msra.gmra.mxu0 %vm165_vm3, %v787_v2  ;;  %1028 = vmatmul.msk.f32.vlgmr.msra.gmra.mxu1 %vm165_vm3, %v787_v2 }
 0xb58   :  { %v807_v5 = vpop.f32.mrf.mxu0  ;;  %v827_v18 = vpop.f32.mrf.mxu1 }
 0xb59   :  { %v831_v7 = vrot.slane %v807_v5, 1  ;;  %v853_v24 = vadd.f32 %v827_v18, %v1436_v40 }
 0xb5b   :  { %v833_v9 = vadd.f32 %v831_v7, %v1429_v28  ;;  %v855_v34 = vrot.slane %v853_v24, 1  ;;  %v1044_v7 = vld [vmem:[%s1572_s6] ss:$0 sm:$0xff] }
 0xb5d   :  { %v1029_v10 = vmul.f32 -1.442695, %v833_v9 }
 0xb5f   :  { %1088 = vpow2.f32 %v1029_v10 }
 0xb65   :  { %v1089_v11 = vpop.eup %1088 }
 0xb66   :  { %v837_v13 = vadd.f32 1.0, %v1089_v11  ;;  %v1045_v11 = vld [vmem:[%s1574_s8] ss:$0 sm:$0xff] }
 0xb68   :  { %1090 = vrcp.f32 %v837_v13  ;;  %v849_v22 = vand.u32 2147483648, %v837_v13  ;;  %v847_v23 = vand.u32 2147483647, %v837_v13  ;;  %vm843_vm9 = vweird.f32 %v837_v13 }
 0xb6a   :  { %v850_v33 = vor.u32 1.1754944e-38, %v849_v22  ;;  %vm848_vm11 = vcmp.eq.f32.partialorder %v847_v23, 8.507059e+37 }
 0xb6e   :  { %v1091_v15 = vpop.eup %1090 }
 0xb6f   :  { %v839_v16 = vmul.f32 %v1091_v15, %v837_v13  ;;  %vm844_vm8 = vweird.f32 %v1091_v15 }
 0xb70   :  { %vm845_vm10 = vmor %vm843_vm9, %vm844_vm8 }
 0xb71   :  { %v840_v19 = vsub.f32 1.0, %v839_v16 }
 0xb73   :  { %v841_v20 = vmul.f32 %v1091_v15, %v840_v19 }
 0xb75   :  { %v842_v60 = vadd.f32 %v1091_v15, %v841_v20 }
 0xb77   :  { %v846_v28 = vsel %vm845_vm10, %v1091_v15, %v842_v60 }
 0xb78   :  { %v851_v36 = vsel %vm848_vm11, %v850_v33, %v846_v28 }
 0xb79   :  { %v857_v37 = vmul.f32 %v855_v34, %v851_v36  ;;  %v868_v38 = vmul.f32 %v866_v35, %v851_v36  ;;  %v860_v42 = vsub.f32 1.0, %v851_v36 }
 0xb7b   :  { %v858_v39 = vadd.f32 %v857_v37, %v1439_v49 }
 0xb7d   :  { %1092 = vtanh.f32 %v858_v39 }
 0xb7e   :  { %1094 = vrcp.f32 %v1240_v50 }
 0xb83   :  { %v1093_v41 = vpop.eup %1092 }
 0xb84   :  { %862 = vrot.lane.b32.xlu0 %v1093_v41, %s1239_s4  ;;  %v1095_v51 = vpop.eup %1094 }
 0xb85   :  { %v899_v52 = vmul.f32 64.0, %v1095_v51  ;;  %vm903_vm13 = vweird.f32 %v1095_v51 }
 0xb87   :  { %v900_v53 = vsub.f32 1.0, %v899_v52 }
 0xb89   :  { %v901_v54 = vmul.f32 %v1095_v51, %v900_v53 }
 0xb8b   :  { %v902_v55 = vadd.f32 %v1095_v51, %v901_v54 }
 0xb8d   :  { %v904_v56 = vsel %vm903_vm13, %v1095_v51, %v902_v55 }
 0xbf6   :  { %v863_v43 = vpop.permute.xlu0 %862 }
 0xbf7   :  { %v865_v40 = vmul.f32 %v863_v43, %v860_v42 }
 0xbf9   :  { %v869_v44 = vadd.f32 %v868_v38, %v865_v40 }
 0xbfb   :  { %v882_v45 = vsel %vm881_vm12, %v880_v1, %v869_v44  ;;  %v1043_v1 = vld [vmem:[%s1571_s5] ss:$0 sm:$0xff]  ;;  %s1241_s5 = smov [#allocation13]  }
 0xbfc   :  { %884 = vrot.lane.b32.xlu1 %v882_v45, %s1239_s4  ;;  %s988_s6 = sshll.u32 %s1241_s5, 4  ;;  %s989_s6 = int_to_ptr.vmem [resolvable:$true] %s988_s6 }
 0xc04   :  { %889 = vrot.lane.b32.xlu1 %v869_v44, %s1239_s4 }
 0xc6e   :  { %v885_v46 = vpop.permute.xlu1 %884 }
 0xc6f   :  { %887 = vst.msk [vmem:[#allocation3] sm:$0xff] %vm165_vm3, %v885_v46 }
 0xc76   :  { %v890_v47 = vpop.permute.xlu1 %889  ;;  %v894_v49 = vld [vmem:[#allocation3] sm:$0xff] }
 0xc77   :  { %893 = vst.msk [vmem:[#allocation4 - $0x7] sm:$0x80] %vm892_vm1, %v890_v47  ;;  %v895_v48 = vsel %vm165_vm3, %v894_v49, 0.0 }
 0xc78   :  { %896 = vadd.xlane.f32.xlu2 %v895_v48 }
 0xceb   :  { %v897_v57 = vpop.xlane.xlu2 %896 }
 0xcec   :  { %v905_v58 = vmul.f32 %v904_v56, %v897_v57 }
 0xcee   :  { %v906_v59 = vsub.f32 %v894_v49, %v905_v58 }
 0xcf0   :  { %v907_v61 = vmul.f32 %v906_v59, %v906_v59 }
 0xcf2   :  { %v908_v62 = vsel %vm165_vm3, %v907_v61, 0.0 }
 0xcf3   :  { %909 = vadd.xlane.f32.xlu0 %v908_v62 }
 0xd66   :  { %v910_v17 = vpop.xlane.xlu0 %909 }
 0xd67   :  { %v911_v21 = vmul.f32 %v910_v17, %v904_v56 }
 0xd69   :  { %v912_v25 = vadd.f32 1e-05, %v911_v21 }
 0xd6b   :  { %1096 = vrsqrt.f32 %v912_v25  ;;  %vm919_vm15 = vweird.f32 %v912_v25 }
 0xd71   :  { %v1097_v26 = vpop.eup %1096 }
 0xd72   :  { %v914_v27 = vmul.f32 %v1097_v26, %v912_v25  ;;  %vm920_vm14 = vweird.f32 %v1097_v26 }
 0xd73   :  { %vm921_vm0 = vmor %vm919_vm15, %vm920_vm14 }
 0xd74   :  { %v915_v29 = vmul.f32 %v1097_v26, %v914_v27 }
 0xd76   :  { %v916_v30 = vmul.f32 0.5, %v915_v29 }
 0xd78   :  { %v917_v31 = vsub.f32 1.5, %v916_v30 }
 0xd7a   :  { %v918_v32 = vmul.f32 %v1097_v26, %v917_v31 }
 0xd7c   :  { %v922_v2 = vsel %vm921_vm0, %v1097_v26, %v918_v32 }
 0xd7d   :  { %v923_v5 = vmul.f32 %v922_v2, %v906_v59 }
 0xd7f   :  { %v928_v9 = vmul.f32 %v1043_v1, %v923_v5 }
 0xd81   :  { %v933_v10 = vadd.f32 %v1044_v7, %v928_v9 }
 0xd83   :  { %1030 = vmatmul.msk.f32.vlgmr.msra.gmra.mxu2 %vm165_vm3, %v933_v10 }
 0xe06   :  { %v966_v13 = vpop.f32.mrf.mxu2 }
 0xe07   :  { %v967_v15 = vadd.f32 %v1045_v11, %v966_v13 }
 0xe09   :  { %v970_v16 = vmul.f32 1.442695, %v967_v15  ;;  %vm969_vm2 = vcmp.gt.f32.partialorder %v967_v15, 20.0 }
 0xe0b   :  { %1098 = vpow2.f32 %v970_v16 }
 0xe11   :  { %v1099_v18 = vpop.eup %1098 }
 0xe12   :  { %v972_v19 = vadd.f32 1.0, %v1099_v18  ;;  %v975_v22 = vmul.f32 -0.5, %v1099_v18  ;;  %v978_v23 = vand.u32 2147483647, %v1099_v18 }
 0xe14   :  { %1100 = vlog2.f32 %v972_v19  ;;  %v976_v20 = vadd.f32 1.0, %v975_v22  ;;  %vm979_vm3 = vcmp.lt.f32.partialorder %v978_v23, 0.0004427343 }
 0xe16   :  { %v977_v33 = vmul.f32 %v1099_v18, %v976_v20 }
 0xe1a   :  { %v1101_v24 = vpop.eup %1100 }
 0xe1b   :  { %v974_v60 = vmul.f32 0.6931472, %v1101_v24 }
 0xe1d   :  { %v980_v28 = vsel %vm979_vm3, %v977_v33, %v974_v60 }
 0xe1e   :  { %v981_v34 = vsel %vm969_vm2, %v967_v15, %v980_v28 }
 0xe1f   :  { %982 = vst [vmem:[#allocation13] sm:$0xff] %v981_v34 }
 0xe20   :  { %993 = dma.vmem_to_hbm [thread:$0]  %s989_s6, 128, %s991_s19, [#allocation7]  }
 0xe21   :  { %1228 = dma.done.wait [#allocation7], 128  }
 0xe22   :  { %1229 = vsyncadd [#allocation7], 4294967168 }
 0xe23   :  { %998 = vsyncpa [#allocation6], 1 }
 0xe24   :  { %999 = vsyncpa [#allocation9], 1 }
 0xe25   :  { %1000 = vsyncpa [#allocation12], 1 }
 0xe26   :  { %1001 = vsyncpa [#allocation7], 1 }

</bundles_post_ra>
